<compile_context>
chip_gen: v5e
topology: v5e:2x2
jax: 0.10.0
libtpu: 0.0.40
codegen_flags: <defaults>
</compile_context>

<pallas_src>
import functools

import jax
import jax.numpy as jnp
from jax.experimental import pallas as pl
from jax.experimental.pallas import tpu as pltpu


# ----------------------------------------------------------------------------
# Fused kernel: kNN adjacency + all GraphConv layers + Gram, Bblk elems / step.
# ----------------------------------------------------------------------------
def _fused_kernel(x_ref, *rest, layer_specs, n, bblk, k):
    """One grid step processes `bblk` set elements packed block-diagonally.

    Refs (in order): x_ref (M, Cin) with M = bblk*n; per layer a fused weight
    (Cin_l, 2*Cout_l) and a bias (1, Cout_l); out_ref (1, n, M) = lane-dense
    Gram slab with slab[t, b*n + i] = <h_b[t], h_b[i]>.
    """
    num_layers = len(layer_specs)
    out_ref = rest[2 * num_layers]
    m = bblk * n

    hs = x_ref[...]                                                  # (M, Cin) f32

    # ---- pairwise squared distances (only the block diagonal is used) ------
    g0 = jax.lax.dot_general(hs, hs, (((1,), (1,)), ((), ())),
                             preferred_element_type=jnp.float32)     # (M, M)
    ri = jax.lax.broadcasted_iota(jnp.int32, (m, 1), 0)              # row idx
    ci = jax.lax.broadcasted_iota(jnp.int32, (1, m), 1)              # col idx
    eye = ri == ci                                                   # (M, M)
    diag = jnp.where(eye, g0, 0.0)
    sq_col = jnp.sum(diag, axis=1, keepdims=True)                    # (M, 1)
    sq_row = jnp.sum(diag, axis=0, keepdims=True)                    # (1, M)
    # NOTE: expanded ||xi||^2+||xj||^2-2xi.xj loses precision for coincident
    # points; fine for kNN selection on well-separated data (monotonic).
    d2 = jnp.maximum(sq_col + sq_row - 2.0 * g0, 0.0)                # (M, M)

    # Block ids without integer division (sums of step functions, VPU only).
    rowblk = jnp.zeros((m, 1), jnp.int32)
    colblk = jnp.zeros((1, m), jnp.int32)
    for blk in range(1, bblk):
        rowblk = rowblk + (ri >= blk * n).astype(jnp.int32)
        colblk = colblk + (ci >= blk * n).astype(jnp.int32)
    same_blk = rowblk == colblk                                      # (M, M)

    # ---- per-node kNN radius: (k+1)-th smallest within-element distance ----
    # (self included) of every column q, via k rounds of remove-the-min.
    # TODO(synk): torch.topk breaks exact-distance ties by index order; the
    # threshold form keeps every tied neighbor (identical for generic inputs).
    dwork = jnp.where(same_blk, d2, jnp.inf)
    for _ in range(k):
        cmin = jnp.min(dwork, axis=0, keepdims=True)                 # (1, M)
        dwork = jnp.where(dwork <= cmin, jnp.inf, dwork)
    thresh = jnp.min(dwork, axis=0, keepdims=True)                   # (1, M)

    # A^T, block-diagonal over the packed elements:
    #   at[p=(b,t), q=(b,i)] = 1  iff  t in knn_b(i)   (edge i -> t)
    at_bd = (same_blk & (~eye) & (d2 <= thresh)).astype(jnp.float32)  # (M, M)

    # ---- GraphConv stack; per layer the weights are fused [W_rel | W_root] -
    for li, (cout, relu) in enumerate(layer_specs):
        w_cat = rest[2 * li][...]                                    # (cin, 2*cout)
        bias = rest[2 * li + 1][...]                                 # (1, cout)
        hw = jnp.dot(hs, w_cat, preferred_element_type=jnp.float32)  # (M, 2*cout)
        rel = jnp.dot(at_bd, hw[:, :cout],
                      preferred_element_type=jnp.float32)            # (M, cout)
        hs = rel + hw[:, cout:] + bias
        if relu:
            hs = jnp.maximum(hs, 0.0)

    # ---- final Gram, written lane-dense: slab[t, b*n+i] = <h_b[t], h_b[i]> -
    gram = jax.lax.dot_general(hs, hs, (((1,), (1,)), ((), ())),
                               preferred_element_type=jnp.float32)   # (M, M)
    slab = jnp.zeros((n, m), jnp.float32)
    for blk in range(bblk):
        rows = gram[blk * n:(blk + 1) * n, :]                        # (n, M)
        slab = slab + jnp.where(colblk == blk, rows, 0.0)
    out_ref[0] = slab


def _pick_batch_block(b, n, lanes=128):
    """Largest divisor of b with block*n <= one full lane dim (when possible)."""
    bb = lanes // n
    if bb < 1:
        bb = 1
    bb = min(bb, b)
    while b % bb:
        bb -= 1
    return max(bb, 1)


# ----------------------------------------------------------------------------
# Full forward.
# ----------------------------------------------------------------------------
def set_to_graph_gnn_forward(x, weights, k):
    b, n, c = x.shape
    k = min(k, n - 1)
    bblk = _pick_batch_block(b, n)
    m = bblk * n

    # Fuse [W_rel | W_root] per layer (tiny concat, stays in the XLA wrapper).
    w_cats = [jnp.concatenate([w_rel, w_root], axis=1)
              for (w_rel, w_root, _bias) in weights]
    biases = [bias for (_w_rel, _w_root, bias) in weights]
    layer_specs = tuple((w_rel.shape[1], li < len(weights) - 1)
                        for li, (w_rel, _w, _b) in enumerate(weights))

    x_flat = x.reshape(b * n, c)
    in_specs = [pl.BlockSpec((m, c), lambda i: (i, 0))]
    flat_args = [x_flat]
    for w_cat, bias in zip(w_cats, biases):
        in_specs.append(pl.BlockSpec(w_cat.shape, lambda i: (0, 0)))
        in_specs.append(pl.BlockSpec(bias.shape, lambda i: (0, 0)))
        flat_args += [w_cat, bias]

    kern = functools.partial(_fused_kernel, layer_specs=layer_specs,
                             n=n, bblk=bblk, k=k)
    # TODO(synk): for large N (bblk*n >> 128) tile the (M, M) work over gram
    # rows / the contraction axis and raise vmem_limit_bytes; whole blocks are
    # fine at these small shapes on all of v5e/v6e/v7x.
    slab = pl.pallas_call(
        kern,
        out_shape=jax.ShapeDtypeStruct((b // bblk, n, m), jnp.float32),
        grid=(b // bblk,),
        in_specs=in_specs,
        out_specs=pl.BlockSpec((1, n, m), lambda i: (i, 0, 0)),
        compiler_params=pltpu.CompilerParams(
            dimension_semantics=("parallel",)),
    )(*flat_args)

    # Unpack the lane-dense slab back to (B, 1, N, N) — layout plumbing only.
    out = slab.reshape(b // bblk, n, bblk, n).transpose(0, 2, 1, 3)
    return out.reshape(b, n, n)[:, None]


# ----------------------------------------------------------------------------
# Pure-JAX reference (mirrors the PyTorch module) + weight init.
# ----------------------------------------------------------------------------
def pure_jax_reference(x, weights, k):
    _b, n, _ = x.shape
    k = min(k, n - 1)
    dist = jnp.linalg.norm(x[:, None, :, :] - x[:, :, None, :], axis=3)
    nbors = jnp.argsort(dist, axis=-1)[:, :, 1:k + 1]
    adj = jax.nn.one_hot(nbors, n, dtype=jnp.float32).sum(axis=2)
    adj_t = jnp.transpose(adj, (0, 2, 1))
    h = x
    for li, (w_rel, w_root, bias) in enumerate(weights):
        agg = jnp.einsum('bij,bjc->bic', adj_t, h)
        h = agg @ w_rel + h @ w_root + bias
        if li < len(weights) - 1:
            h = jax.nn.relu(h)
    return (h @ jnp.swapaxes(h, 1, 2))[:, None]


def init_weights(key, in_features, params):
    weights = []
    last = in_features
    for p in params:
        key, k1, k2, k3 = jax.random.split(key, 4)
        w_rel = 0.1 * jax.random.normal(k1, (last, p), dtype=jnp.float32)
        w_root = 0.1 * jax.random.normal(k2, (last, p), dtype=jnp.float32)
        bias = 0.1 * jax.random.normal(k3, (1, p), dtype=jnp.float32)
        weights.append((w_rel, w_root, bias))
        last = p
    return weights


if __name__ == "__main__":
    B, N, C_IN = 16, 16, 2          # B sets of N points, 2-D features
    K = 4                           # kNN neighbors
    PARAMS = [32, 32, 8]            # GraphConv hidden sizes

    key = jax.random.PRNGKey(0)
    key, kx = jax.random.split(key)
    x = jax.random.normal(kx, (B, N, C_IN), dtype=jnp.float32)
    weights = init_weights(key, C_IN, PARAMS)

    out = set_to_graph_gnn_forward(x, weights, K)
    out = jax.block_until_ready(out)

    ref = pure_jax_reference(x, weights, K)
    assert out.shape == (B, 1, N, N), out.shape
    assert jnp.allclose(out, ref, rtol=1e-4, atol=1e-4), "mismatch vs reference"

    print("KERNEL_OK")
</pallas_src>

<mosaic_0001>
module attributes {stable_mosaic.version = 11 : i64} {
  func.func @_fused_kernel(%arg0: i32, %arg1: memref<128x2xf32, #tpu.memory_space<vmem>>, %arg2: memref<2x64xf32, #tpu.memory_space<vmem>>, %arg3: memref<1x32xf32, #tpu.memory_space<vmem>>, %arg4: memref<32x64xf32, #tpu.memory_space<vmem>>, %arg5: memref<1x32xf32, #tpu.memory_space<vmem>>, %arg6: memref<32x16xf32, #tpu.memory_space<vmem>>, %arg7: memref<1x8xf32, #tpu.memory_space<vmem>>, %arg8: memref<1x16x128xf32, #tpu.memory_space<vmem>>) attributes {dimension_semantics = [#tpu.dimension_semantics<parallel>], iteration_bounds = array<i64: 2>, scalar_prefetch = 0 : i64, scratch_operands = 0 : i64, tpu.core_type = #tpu.core_type<tc>, window_params = [{transform_indices = @transform_0, window_bounds = array<i64: 128, 2>}, {pipeline_mode = #tpu.pipeline_mode<synchronous>, transform_indices = @transform_1, window_bounds = array<i64: 2, 64>}, {pipeline_mode = #tpu.pipeline_mode<synchronous>, transform_indices = @transform_2, window_bounds = array<i64: 1, 32>}, {pipeline_mode = #tpu.pipeline_mode<synchronous>, transform_indices = @transform_3, window_bounds = array<i64: 32, 64>}, {pipeline_mode = #tpu.pipeline_mode<synchronous>, transform_indices = @transform_4, window_bounds = array<i64: 1, 32>}, {pipeline_mode = #tpu.pipeline_mode<synchronous>, transform_indices = @transform_5, window_bounds = array<i64: 32, 16>}, {pipeline_mode = #tpu.pipeline_mode<synchronous>, transform_indices = @transform_6, window_bounds = array<i64: 1, 8>}, {transform_indices = @transform_7, window_bounds = array<i64: 1, 16, 128>}]} {
    %c0 = arith.constant 0 : index
    %c0_0 = arith.constant 0 : index
    %0 = vector.load %arg1[%c0, %c0_0] : memref<128x2xf32, #tpu.memory_space<vmem>>, vector<128x2xf32>
    %cst = arith.constant dense<0.000000e+00> : vector<128x128xf32>
    %1 = tpu.matmul %0, %0, %cst {dimension_numbers = #tpu.dot_dimension_numbers<[1], [1], [0], [0], [0, 0, 1, 0], [], []>} : vector<128x2xf32>, vector<128x2xf32>, vector<128x128xf32> -> vector<128x128xf32>
    %2 = tpu.iota {dimensions = array<i32: 0>} : vector<128x1xi32>
    %3 = tpu.iota {dimensions = array<i32: 1>} : vector<1x128xi32>
    %4 = vector.broadcast %2 : vector<128x1xi32> to vector<128x128xi32>
    %5 = vector.broadcast %3 : vector<1x128xi32> to vector<128x128xi32>
    %6 = arith.cmpi eq, %4, %5 : vector<128x128xi32>
    %cst_1 = arith.constant 0.000000e+00 : f32
    %7 = vector.broadcast %cst_1 : f32 to vector<128x128xf32>
    %8 = arith.select %6, %1, %7 : vector<128x128xi1>, vector<128x128xf32>
    %cst_2 = arith.constant dense<0.000000e+00> : vector<128xf32>
    %9 = vector.multi_reduction <add>, %8, %cst_2 [1] : vector<128x128xf32> to vector<128xf32>
    %10 = vector.shape_cast %9 : vector<128xf32> to vector<128x1xf32>
    %cst_3 = arith.constant dense<0.000000e+00> : vector<128xf32>
    %11 = vector.multi_reduction <add>, %8, %cst_3 [0] : vector<128x128xf32> to vector<128xf32>
    %12 = vector.shape_cast %11 : vector<128xf32> to vector<1x128xf32>
    %13 = vector.broadcast %10 : vector<128x1xf32> to vector<128x128xf32>
    %14 = vector.broadcast %12 : vector<1x128xf32> to vector<128x128xf32>
    %15 = arith.addf %13, %14 : vector<128x128xf32>
    %cst_4 = arith.constant 2.000000e+00 : f32
    %16 = vector.broadcast %cst_4 : f32 to vector<128x128xf32>
    %17 = arith.mulf %16, %1 : vector<128x128xf32>
    %18 = arith.subf %15, %17 : vector<128x128xf32>
    %cst_5 = arith.constant 0.000000e+00 : f32
    %19 = vector.broadcast %cst_5 : f32 to vector<128x128xf32>
    %20 = arith.maximumf %18, %19 : vector<128x128xf32>
    %c0_i32 = arith.constant 0 : i32
    %21 = vector.broadcast %c0_i32 : i32 to vector<128x1xi32>
    %c0_i32_6 = arith.constant 0 : i32
    %22 = vector.broadcast %c0_i32_6 : i32 to vector<1x128xi32>
    %c16_i32 = arith.constant 16 : i32
    %23 = vector.broadcast %c16_i32 : i32 to vector<128x1xi32>
    %24 = arith.cmpi sge, %2, %23 : vector<128x1xi32>
    %25 = arith.extui %24 : vector<128x1xi1> to vector<128x1xi32>
    %26 = arith.addi %21, %25 : vector<128x1xi32>
    %c16_i32_7 = arith.constant 16 : i32
    %27 = vector.broadcast %c16_i32_7 : i32 to vector<1x128xi32>
    %28 = arith.cmpi sge, %3, %27 : vector<1x128xi32>
    %29 = arith.extui %28 : vector<1x128xi1> to vector<1x128xi32>
    %30 = arith.addi %22, %29 : vector<1x128xi32>
    %c32_i32 = arith.constant 32 : i32
    %31 = vector.broadcast %c32_i32 : i32 to vector<128x1xi32>
    %32 = arith.cmpi sge, %2, %31 : vector<128x1xi32>
    %33 = arith.extui %32 : vector<128x1xi1> to vector<128x1xi32>
    %34 = arith.addi %26, %33 : vector<128x1xi32>
    %c32_i32_8 = arith.constant 32 : i32
    %35 = vector.broadcast %c32_i32_8 : i32 to vector<1x128xi32>
    %36 = arith.cmpi sge, %3, %35 : vector<1x128xi32>
    %37 = arith.extui %36 : vector<1x128xi1> to vector<1x128xi32>
    %38 = arith.addi %30, %37 : vector<1x128xi32>
    %c48_i32 = arith.constant 48 : i32
    %39 = vector.broadcast %c48_i32 : i32 to vector<128x1xi32>
    %40 = arith.cmpi sge, %2, %39 : vector<128x1xi32>
    %41 = arith.extui %40 : vector<128x1xi1> to vector<128x1xi32>
    %42 = arith.addi %34, %41 : vector<128x1xi32>
    %c48_i32_9 = arith.constant 48 : i32
    %43 = vector.broadcast %c48_i32_9 : i32 to vector<1x128xi32>
    %44 = arith.cmpi sge, %3, %43 : vector<1x128xi32>
    %45 = arith.extui %44 : vector<1x128xi1> to vector<1x128xi32>
    %46 = arith.addi %38, %45 : vector<1x128xi32>
    %c64_i32 = arith.constant 64 : i32
    %47 = vector.broadcast %c64_i32 : i32 to vector<128x1xi32>
    %48 = arith.cmpi sge, %2, %47 : vector<128x1xi32>
    %49 = arith.extui %48 : vector<128x1xi1> to vector<128x1xi32>
    %50 = arith.addi %42, %49 : vector<128x1xi32>
    %c64_i32_10 = arith.constant 64 : i32
    %51 = vector.broadcast %c64_i32_10 : i32 to vector<1x128xi32>
    %52 = arith.cmpi sge, %3, %51 : vector<1x128xi32>
    %53 = arith.extui %52 : vector<1x128xi1> to vector<1x128xi32>
    %54 = arith.addi %46, %53 : vector<1x128xi32>
    %c80_i32 = arith.constant 80 : i32
    %55 = vector.broadcast %c80_i32 : i32 to vector<128x1xi32>
    %56 = arith.cmpi sge, %2, %55 : vector<128x1xi32>
    %57 = arith.extui %56 : vector<128x1xi1> to vector<128x1xi32>
    %58 = arith.addi %50, %57 : vector<128x1xi32>
    %c80_i32_11 = arith.constant 80 : i32
    %59 = vector.broadcast %c80_i32_11 : i32 to vector<1x128xi32>
    %60 = arith.cmpi sge, %3, %59 : vector<1x128xi32>
    %61 = arith.extui %60 : vector<1x128xi1> to vector<1x128xi32>
    %62 = arith.addi %54, %61 : vector<1x128xi32>
    %c96_i32 = arith.constant 96 : i32
    %63 = vector.broadcast %c96_i32 : i32 to vector<128x1xi32>
    %64 = arith.cmpi sge, %2, %63 : vector<128x1xi32>
    %65 = arith.extui %64 : vector<128x1xi1> to vector<128x1xi32>
    %66 = arith.addi %58, %65 : vector<128x1xi32>
    %c96_i32_12 = arith.constant 96 : i32
    %67 = vector.broadcast %c96_i32_12 : i32 to vector<1x128xi32>
    %68 = arith.cmpi sge, %3, %67 : vector<1x128xi32>
    %69 = arith.extui %68 : vector<1x128xi1> to vector<1x128xi32>
    %70 = arith.addi %62, %69 : vector<1x128xi32>
    %c112_i32 = arith.constant 112 : i32
    %71 = vector.broadcast %c112_i32 : i32 to vector<128x1xi32>
    %72 = arith.cmpi sge, %2, %71 : vector<128x1xi32>
    %73 = arith.extui %72 : vector<128x1xi1> to vector<128x1xi32>
    %74 = arith.addi %66, %73 : vector<128x1xi32>
    %c112_i32_13 = arith.constant 112 : i32
    %75 = vector.broadcast %c112_i32_13 : i32 to vector<1x128xi32>
    %76 = arith.cmpi sge, %3, %75 : vector<1x128xi32>
    %77 = arith.extui %76 : vector<1x128xi1> to vector<1x128xi32>
    %78 = arith.addi %70, %77 : vector<1x128xi32>
    %79 = vector.broadcast %74 : vector<128x1xi32> to vector<128x128xi32>
    %80 = vector.broadcast %78 : vector<1x128xi32> to vector<128x128xi32>
    %81 = arith.cmpi eq, %79, %80 : vector<128x128xi32>
    %cst_14 = arith.constant 0x7F800000 : f32
    %82 = vector.broadcast %cst_14 : f32 to vector<128x128xf32>
    %83 = arith.select %81, %20, %82 : vector<128x128xi1>, vector<128x128xf32>
    %cst_15 = arith.constant dense<0x7F800000> : vector<128xf32>
    %84 = vector.multi_reduction <minimumf>, %83, %cst_15 [0] : vector<128x128xf32> to vector<128xf32>
    %85 = vector.shape_cast %84 : vector<128xf32> to vector<1x128xf32>
    %86 = vector.broadcast %85 : vector<1x128xf32> to vector<128x128xf32>
    %87 = arith.cmpf ole, %83, %86 : vector<128x128xf32>
    %cst_16 = arith.constant 0x7F800000 : f32
    %88 = vector.broadcast %cst_16 : f32 to vector<128x128xf32>
    %89 = arith.select %87, %88, %83 : vector<128x128xi1>, vector<128x128xf32>
    %cst_17 = arith.constant dense<0x7F800000> : vector<128xf32>
    %90 = vector.multi_reduction <minimumf>, %89, %cst_17 [0] : vector<128x128xf32> to vector<128xf32>
    %91 = vector.shape_cast %90 : vector<128xf32> to vector<1x128xf32>
    %92 = vector.broadcast %91 : vector<1x128xf32> to vector<128x128xf32>
    %93 = arith.cmpf ole, %89, %92 : vector<128x128xf32>
    %cst_18 = arith.constant 0x7F800000 : f32
    %94 = vector.broadcast %cst_18 : f32 to vector<128x128xf32>
    %95 = arith.select %93, %94, %89 : vector<128x128xi1>, vector<128x128xf32>
    %cst_19 = arith.constant dense<0x7F800000> : vector<128xf32>
    %96 = vector.multi_reduction <minimumf>, %95, %cst_19 [0] : vector<128x128xf32> to vector<128xf32>
    %97 = vector.shape_cast %96 : vector<128xf32> to vector<1x128xf32>
    %98 = vector.broadcast %97 : vector<1x128xf32> to vector<128x128xf32>
    %99 = arith.cmpf ole, %95, %98 : vector<128x128xf32>
    %cst_20 = arith.constant 0x7F800000 : f32
    %100 = vector.broadcast %cst_20 : f32 to vector<128x128xf32>
    %101 = arith.select %99, %100, %95 : vector<128x128xi1>, vector<128x128xf32>
    %cst_21 = arith.constant dense<0x7F800000> : vector<128xf32>
    %102 = vector.multi_reduction <minimumf>, %101, %cst_21 [0] : vector<128x128xf32> to vector<128xf32>
    %103 = vector.shape_cast %102 : vector<128xf32> to vector<1x128xf32>
    %104 = vector.broadcast %103 : vector<1x128xf32> to vector<128x128xf32>
    %105 = arith.cmpf ole, %101, %104 : vector<128x128xf32>
    %cst_22 = arith.constant 0x7F800000 : f32
    %106 = vector.broadcast %cst_22 : f32 to vector<128x128xf32>
    %107 = arith.select %105, %106, %101 : vector<128x128xi1>, vector<128x128xf32>
    %cst_23 = arith.constant dense<0x7F800000> : vector<128xf32>
    %108 = vector.multi_reduction <minimumf>, %107, %cst_23 [0] : vector<128x128xf32> to vector<128xf32>
    %109 = vector.shape_cast %108 : vector<128xf32> to vector<1x128xf32>
    %cst_24 = arith.constant dense<true> : vector<128x128xi1>
    %110 = arith.xori %6, %cst_24 : vector<128x128xi1>
    %111 = arith.andi %81, %110 : vector<128x128xi1>
    %112 = vector.broadcast %109 : vector<1x128xf32> to vector<128x128xf32>
    %113 = arith.cmpf ole, %20, %112 : vector<128x128xf32>
    %114 = arith.andi %111, %113 : vector<128x128xi1>
    %115 = arith.extui %114 : vector<128x128xi1> to vector<128x128xi32>
    %116 = arith.sitofp %115 : vector<128x128xi32> to vector<128x128xf32>
    %c0_25 = arith.constant 0 : index
    %c0_26 = arith.constant 0 : index
    %117 = vector.load %arg2[%c0_25, %c0_26] : memref<2x64xf32, #tpu.memory_space<vmem>>, vector<2x64xf32>
    %c0_27 = arith.constant 0 : index
    %c0_28 = arith.constant 0 : index
    %118 = vector.load %arg3[%c0_27, %c0_28] : memref<1x32xf32, #tpu.memory_space<vmem>>, vector<1x32xf32>
    %cst_29 = arith.constant dense<0.000000e+00> : vector<128x64xf32>
    %119 = tpu.matmul %0, %117, %cst_29 {dimension_numbers = #tpu.dot_dimension_numbers<[1], [0], [0], [1], [0, 0, 1, 1], [], []>} : vector<128x2xf32>, vector<2x64xf32>, vector<128x64xf32> -> vector<128x64xf32>
    %120 = vector.extract_strided_slice %119 {offsets = [0, 0], sizes = [128, 32], strides = [1, 1]} : vector<128x64xf32> to vector<128x32xf32>
    %cst_30 = arith.constant dense<0.000000e+00> : vector<128x32xf32>
    %121 = tpu.matmul %116, %120, %cst_30 {dimension_numbers = #tpu.dot_dimension_numbers<[1], [0], [0], [1], [0, 0, 1, 1], [], []>} : vector<128x128xf32>, vector<128x32xf32>, vector<128x32xf32> -> vector<128x32xf32>
    %122 = vector.extract_strided_slice %119 {offsets = [0, 32], sizes = [128, 32], strides = [1, 1]} : vector<128x64xf32> to vector<128x32xf32>
    %123 = arith.addf %121, %122 : vector<128x32xf32>
    %124 = vector.broadcast %118 : vector<1x32xf32> to vector<128x32xf32>
    %125 = arith.addf %123, %124 : vector<128x32xf32>
    %cst_31 = arith.constant 0.000000e+00 : f32
    %126 = vector.broadcast %cst_31 : f32 to vector<128x32xf32>
    %127 = arith.maximumf %125, %126 : vector<128x32xf32>
    %c0_32 = arith.constant 0 : index
    %c0_33 = arith.constant 0 : index
    %128 = vector.load %arg4[%c0_32, %c0_33] : memref<32x64xf32, #tpu.memory_space<vmem>>, vector<32x64xf32>
    %c0_34 = arith.constant 0 : index
    %c0_35 = arith.constant 0 : index
    %129 = vector.load %arg5[%c0_34, %c0_35] : memref<1x32xf32, #tpu.memory_space<vmem>>, vector<1x32xf32>
    %cst_36 = arith.constant dense<0.000000e+00> : vector<128x64xf32>
    %130 = tpu.matmul %127, %128, %cst_36 {dimension_numbers = #tpu.dot_dimension_numbers<[1], [0], [0], [1], [0, 0, 1, 1], [], []>} : vector<128x32xf32>, vector<32x64xf32>, vector<128x64xf32> -> vector<128x64xf32>
    %131 = vector.extract_strided_slice %130 {offsets = [0, 0], sizes = [128, 32], strides = [1, 1]} : vector<128x64xf32> to vector<128x32xf32>
    %cst_37 = arith.constant dense<0.000000e+00> : vector<128x32xf32>
    %132 = tpu.matmul %116, %131, %cst_37 {dimension_numbers = #tpu.dot_dimension_numbers<[1], [0], [0], [1], [0, 0, 1, 1], [], []>} : vector<128x128xf32>, vector<128x32xf32>, vector<128x32xf32> -> vector<128x32xf32>
    %133 = vector.extract_strided_slice %130 {offsets = [0, 32], sizes = [128, 32], strides = [1, 1]} : vector<128x64xf32> to vector<128x32xf32>
    %134 = arith.addf %132, %133 : vector<128x32xf32>
    %135 = vector.broadcast %129 : vector<1x32xf32> to vector<128x32xf32>
    %136 = arith.addf %134, %135 : vector<128x32xf32>
    %cst_38 = arith.constant 0.000000e+00 : f32
    %137 = vector.broadcast %cst_38 : f32 to vector<128x32xf32>
    %138 = arith.maximumf %136, %137 : vector<128x32xf32>
    %c0_39 = arith.constant 0 : index
    %c0_40 = arith.constant 0 : index
    %139 = vector.load %arg6[%c0_39, %c0_40] : memref<32x16xf32, #tpu.memory_space<vmem>>, vector<32x16xf32>
    %c0_41 = arith.constant 0 : index
    %c0_42 = arith.constant 0 : index
    %140 = vector.load %arg7[%c0_41, %c0_42] : memref<1x8xf32, #tpu.memory_space<vmem>>, vector<1x8xf32>
    %cst_43 = arith.constant dense<0.000000e+00> : vector<128x16xf32>
    %141 = tpu.matmul %138, %139, %cst_43 {dimension_numbers = #tpu.dot_dimension_numbers<[1], [0], [0], [1], [0, 0, 1, 1], [], []>} : vector<128x32xf32>, vector<32x16xf32>, vector<128x16xf32> -> vector<128x16xf32>
    %142 = vector.extract_strided_slice %141 {offsets = [0, 0], sizes = [128, 8], strides = [1, 1]} : vector<128x16xf32> to vector<128x8xf32>
    %cst_44 = arith.constant dense<0.000000e+00> : vector<128x8xf32>
    %143 = tpu.matmul %116, %142, %cst_44 {dimension_numbers = #tpu.dot_dimension_numbers<[1], [0], [0], [1], [0, 0, 1, 1], [], []>} : vector<128x128xf32>, vector<128x8xf32>, vector<128x8xf32> -> vector<128x8xf32>
    %144 = vector.extract_strided_slice %141 {offsets = [0, 8], sizes = [128, 8], strides = [1, 1]} : vector<128x16xf32> to vector<128x8xf32>
    %145 = arith.addf %143, %144 : vector<128x8xf32>
    %146 = vector.broadcast %140 : vector<1x8xf32> to vector<128x8xf32>
    %147 = arith.addf %145, %146 : vector<128x8xf32>
    %cst_45 = arith.constant dense<0.000000e+00> : vector<128x128xf32>
    %148 = tpu.matmul %147, %147, %cst_45 {dimension_numbers = #tpu.dot_dimension_numbers<[1], [1], [0], [0], [0, 0, 1, 0], [], []>} : vector<128x8xf32>, vector<128x8xf32>, vector<128x128xf32> -> vector<128x128xf32>
    %cst_46 = arith.constant 0.000000e+00 : f32
    %149 = vector.broadcast %cst_46 : f32 to vector<16x128xf32>
    %150 = vector.extract_strided_slice %148 {offsets = [0, 0], sizes = [16, 128], strides = [1, 1]} : vector<128x128xf32> to vector<16x128xf32>
    %c0_i32_47 = arith.constant 0 : i32
    %151 = vector.broadcast %c0_i32_47 : i32 to vector<1x128xi32>
    %152 = arith.cmpi eq, %78, %151 : vector<1x128xi32>
    %cst_48 = arith.constant 0.000000e+00 : f32
    %153 = vector.shape_cast %152 : vector<1x128xi1> to vector<1x128xi1>
    %154 = vector.broadcast %153 : vector<1x128xi1> to vector<16x128xi1>
    %155 = vector.broadcast %cst_48 : f32 to vector<16x128xf32>
    %156 = arith.select %154, %150, %155 : vector<16x128xi1>, vector<16x128xf32>
    %157 = arith.addf %149, %156 : vector<16x128xf32>
    %158 = vector.extract_strided_slice %148 {offsets = [16, 0], sizes = [16, 128], strides = [1, 1]} : vector<128x128xf32> to vector<16x128xf32>
    %c1_i32 = arith.constant 1 : i32
    %159 = vector.broadcast %c1_i32 : i32 to vector<1x128xi32>
    %160 = arith.cmpi eq, %78, %159 : vector<1x128xi32>
    %cst_49 = arith.constant 0.000000e+00 : f32
    %161 = vector.shape_cast %160 : vector<1x128xi1> to vector<1x128xi1>
    %162 = vector.broadcast %161 : vector<1x128xi1> to vector<16x128xi1>
    %163 = vector.broadcast %cst_49 : f32 to vector<16x128xf32>
    %164 = arith.select %162, %158, %163 : vector<16x128xi1>, vector<16x128xf32>
    %165 = arith.addf %157, %164 : vector<16x128xf32>
    %166 = vector.extract_strided_slice %148 {offsets = [32, 0], sizes = [16, 128], strides = [1, 1]} : vector<128x128xf32> to vector<16x128xf32>
    %c2_i32 = arith.constant 2 : i32
    %167 = vector.broadcast %c2_i32 : i32 to vector<1x128xi32>
    %168 = arith.cmpi eq, %78, %167 : vector<1x128xi32>
    %cst_50 = arith.constant 0.000000e+00 : f32
    %169 = vector.shape_cast %168 : vector<1x128xi1> to vector<1x128xi1>
    %170 = vector.broadcast %169 : vector<1x128xi1> to vector<16x128xi1>
    %171 = vector.broadcast %cst_50 : f32 to vector<16x128xf32>
    %172 = arith.select %170, %166, %171 : vector<16x128xi1>, vector<16x128xf32>
    %173 = arith.addf %165, %172 : vector<16x128xf32>
    %174 = vector.extract_strided_slice %148 {offsets = [48, 0], sizes = [16, 128], strides = [1, 1]} : vector<128x128xf32> to vector<16x128xf32>
    %c3_i32 = arith.constant 3 : i32
    %175 = vector.broadcast %c3_i32 : i32 to vector<1x128xi32>
    %176 = arith.cmpi eq, %78, %175 : vector<1x128xi32>
    %cst_51 = arith.constant 0.000000e+00 : f32
    %177 = vector.shape_cast %176 : vector<1x128xi1> to vector<1x128xi1>
    %178 = vector.broadcast %177 : vector<1x128xi1> to vector<16x128xi1>
    %179 = vector.broadcast %cst_51 : f32 to vector<16x128xf32>
    %180 = arith.select %178, %174, %179 : vector<16x128xi1>, vector<16x128xf32>
    %181 = arith.addf %173, %180 : vector<16x128xf32>
    %182 = vector.extract_strided_slice %148 {offsets = [64, 0], sizes = [16, 128], strides = [1, 1]} : vector<128x128xf32> to vector<16x128xf32>
    %c4_i32 = arith.constant 4 : i32
    %183 = vector.broadcast %c4_i32 : i32 to vector<1x128xi32>
    %184 = arith.cmpi eq, %78, %183 : vector<1x128xi32>
    %cst_52 = arith.constant 0.000000e+00 : f32
    %185 = vector.shape_cast %184 : vector<1x128xi1> to vector<1x128xi1>
    %186 = vector.broadcast %185 : vector<1x128xi1> to vector<16x128xi1>
    %187 = vector.broadcast %cst_52 : f32 to vector<16x128xf32>
    %188 = arith.select %186, %182, %187 : vector<16x128xi1>, vector<16x128xf32>
    %189 = arith.addf %181, %188 : vector<16x128xf32>
    %190 = vector.extract_strided_slice %148 {offsets = [80, 0], sizes = [16, 128], strides = [1, 1]} : vector<128x128xf32> to vector<16x128xf32>
    %c5_i32 = arith.constant 5 : i32
    %191 = vector.broadcast %c5_i32 : i32 to vector<1x128xi32>
    %192 = arith.cmpi eq, %78, %191 : vector<1x128xi32>
    %cst_53 = arith.constant 0.000000e+00 : f32
    %193 = vector.shape_cast %192 : vector<1x128xi1> to vector<1x128xi1>
    %194 = vector.broadcast %193 : vector<1x128xi1> to vector<16x128xi1>
    %195 = vector.broadcast %cst_53 : f32 to vector<16x128xf32>
    %196 = arith.select %194, %190, %195 : vector<16x128xi1>, vector<16x128xf32>
    %197 = arith.addf %189, %196 : vector<16x128xf32>
    %198 = vector.extract_strided_slice %148 {offsets = [96, 0], sizes = [16, 128], strides = [1, 1]} : vector<128x128xf32> to vector<16x128xf32>
    %c6_i32 = arith.constant 6 : i32
    %199 = vector.broadcast %c6_i32 : i32 to vector<1x128xi32>
    %200 = arith.cmpi eq, %78, %199 : vector<1x128xi32>
    %cst_54 = arith.constant 0.000000e+00 : f32
    %201 = vector.shape_cast %200 : vector<1x128xi1> to vector<1x128xi1>
    %202 = vector.broadcast %201 : vector<1x128xi1> to vector<16x128xi1>
    %203 = vector.broadcast %cst_54 : f32 to vector<16x128xf32>
    %204 = arith.select %202, %198, %203 : vector<16x128xi1>, vector<16x128xf32>
    %205 = arith.addf %197, %204 : vector<16x128xf32>
    %206 = vector.extract_strided_slice %148 {offsets = [112, 0], sizes = [16, 128], strides = [1, 1]} : vector<128x128xf32> to vector<16x128xf32>
    %c7_i32 = arith.constant 7 : i32
    %207 = vector.broadcast %c7_i32 : i32 to vector<1x128xi32>
    %208 = arith.cmpi eq, %78, %207 : vector<1x128xi32>
    %cst_55 = arith.constant 0.000000e+00 : f32
    %209 = vector.shape_cast %208 : vector<1x128xi1> to vector<1x128xi1>
    %210 = vector.broadcast %209 : vector<1x128xi1> to vector<16x128xi1>
    %211 = vector.broadcast %cst_55 : f32 to vector<16x128xf32>
    %212 = arith.select %210, %206, %211 : vector<16x128xi1>, vector<16x128xf32>
    %213 = arith.addf %205, %212 : vector<16x128xf32>
    %c0_56 = arith.constant 0 : index
    %c0_57 = arith.constant 0 : index
    %c0_58 = arith.constant 0 : index
    %214 = vector.load %arg8[%c0_56, %c0_57, %c0_58] : memref<1x16x128xf32, #tpu.memory_space<vmem>>, vector<1x16x128xf32>
    %215 = vector.shape_cast %214 : vector<1x16x128xf32> to vector<16x128xf32>
    %216 = vector.shape_cast %213 : vector<16x128xf32> to vector<1x16x128xf32>
    tpu.vector_store %arg8[%c0_56, %c0_57, %c0_58], %216 {strides = array<i32>} : memref<1x16x128xf32, #tpu.memory_space<vmem>>, vector<1x16x128xf32>,
    return
  }
  func.func @transform_0(%arg0: i32) -> (i32, i32) {
    %c0_i32 = arith.constant 0 : i32
    %c0_i32_0 = arith.constant 0 : i32
    return %arg0, %c0_i32 : i32, i32
  }
  func.func @transform_1(%arg0: i32) -> (i32, i32) {
    %c0_i32 = arith.constant 0 : i32
    %c0_i32_0 = arith.constant 0 : i32
    %c0_i32_1 = arith.constant 0 : i32
    return %c0_i32, %c0_i32_0 : i32, i32
  }
  func.func @transform_2(%arg0: i32) -> (i32, i32) {
    %c0_i32 = arith.constant 0 : i32
    %c0_i32_0 = arith.constant 0 : i32
    %c0_i32_1 = arith.constant 0 : i32
    return %c0_i32, %c0_i32_0 : i32, i32
  }
  func.func @transform_3(%arg0: i32) -> (i32, i32) {
    %c0_i32 = arith.constant 0 : i32
    %c0_i32_0 = arith.constant 0 : i32
    %c0_i32_1 = arith.constant 0 : i32
    return %c0_i32, %c0_i32_0 : i32, i32
  }
  func.func @transform_4(%arg0: i32) -> (i32, i32) {
    %c0_i32 = arith.constant 0 : i32
    %c0_i32_0 = arith.constant 0 : i32
    %c0_i32_1 = arith.constant 0 : i32
    return %c0_i32, %c0_i32_0 : i32, i32
  }
  func.func @transform_5(%arg0: i32) -> (i32, i32) {
    %c0_i32 = arith.constant 0 : i32
    %c0_i32_0 = arith.constant 0 : i32
    %c0_i32_1 = arith.constant 0 : i32
    return %c0_i32, %c0_i32_0 : i32, i32
  }
  func.func @transform_6(%arg0: i32) -> (i32, i32) {
    %c0_i32 = arith.constant 0 : i32
    %c0_i32_0 = arith.constant 0 : i32
    %c0_i32_1 = arith.constant 0 : i32
    return %c0_i32, %c0_i32_0 : i32, i32
  }
  func.func @transform_7(%arg0: i32) -> (i32, i32, i32) {
    %c0_i32 = arith.constant 0 : i32
    %c0_i32_0 = arith.constant 0 : i32
    %c0_i32_1 = arith.constant 0 : i32
    return %arg0, %c0_i32, %c0_i32_0 : i32, i32, i32
  }
}

</mosaic_0001>

<bundles_post_ra>
// kernel: tpu_custom_call.1
= control target key start
LH: loop header
LB: loop body
LE: loop exit
PB: predicated region body
PF: predicated region fallthrough
CT: control target
= control target key end

     0   :  { %12 = vsyncpa [#allocation3], 0  ;;  %s4058_s0 = inlined_call_operand.vmem [shape: f32[256,2], index: 0, kind: input, shape index: {}]   ;;  %s4059_s1 = inlined_call_operand.vmem [shape: f32[2,64], index: 1, kind: input, shape index: {}]   ;;  %s4060_s2 = inlined_call_operand.vmem [shape: f32[1,32], index: 2, kind: input, shape index: {}]   ;;  %s4061_s3 = inlined_call_operand.vmem [shape: f32[32,64], index: 3, kind: input, shape index: {}]   ;;  %s4062_s4 = inlined_call_operand.vmem [shape: f32[1,32], index: 4, kind: input, shape index: {}]   ;;  %s4063_s5 = inlined_call_operand.vmem [shape: f32[32,16], index: 5, kind: input, shape index: {}]   ;;  %s4064_s6 = inlined_call_operand.vmem [shape: f32[1,8], index: 6, kind: input, shape index: {}]   ;;  %s4065_s7 = inlined_call_operand.hbm [shape: f32[2,16,128], index: 7, kind: output, shape index: {}]  }
   0x1   :  { %14 = vsyncpa [#allocation3 + $0x1], 0  ;;  %s2695_s24 = smov 0   ;;  %s2697_s25 = smov 0  }
   0x2   :  { %s2699_s26 = smov 0   ;;  %s2701_s27 = smov 0  }
   0x3 LB: > { %s2311_s28 = sadd.s32 4294967295, %s2646_s27   ;;  %s2312_s29 = sadd.s32 4294967294, %s2646_s27   ;;  %s2646_s27 = sphi %s2701_s27, %s4294_s27   ;;  %s2642_s26 = sphi %s2699_s26, %s4293_s26   ;;  %s2638_s25 = sphi %s2697_s25, %s4292_s25   ;;  %s2634_s24 = sphi %s2695_s24, %s4291_s24  }
   0x4   : > { %s2718_s30 = sadd.s32 1, %s2646_s27   ;;  %s179_s8 = sadd.s32 1, %s2642_s26 }
   0x5   : > { %s176_s9 = ssub.s32 %s2646_s27, %s2718_s30  ;;  %p189_p0 = scmp.ne.s32.totalorder %s2642_s26, %s2638_s25 }
   0x6   : > { %p177_p1 = scmp.eq.s32.totalorder %s176_s9, 0  ;;  %p190_p2 = scmp.eq.s32.totalorder %s2311_s28, 1 }
   0x7   : > { %p195_p3 = scmp.ne.s32.totalorder %s2638_s25, %s2634_s24  ;;  %p196_p4 = scmp.eq.s32.totalorder %s2312_s29, 1 }
   0x8   : > { %s2728_s10 = scalar_select %p177_p1, %s2642_s26, %s179_s8  }
   0x9   : > { %p2730_p5 = por %p190_p2, %p189_p0  ;;  %p2734_p6 = por %p196_p4, %p195_p3 }
   0xa   : > { %p2315_p7 = scmp.ge.s32.totalorder %s2646_s27, 1  ;;  %p241_p8 = scmp.lt.s32.totalorder %s2646_s27, 3 }
   0xc   : > { %p242_p9 = pnand %p2315_p7, %p241_p8 }
   0xe   : > { %245 = sbr.rel (%p242_p9) target bundleno = 1977 (0x7b9), region = 48 }
  0x13   : > { %s2740_s13 = sshll.u32 %s2311_s28, 4  ;;  %vm295_vm0 = vcmask 15360   ;;  %v1278_v16 = vld [vmem:[%s4059_s1] sm:$0x3]  ;;  %vm1280_vm1 = vcmask 1041408   ;;  %v409_v17 = vlaneseq  ;;  %s2648_s21 = smov 96  }
  0x14   : > { %p274_p10 = scmp.lt.s32.totalorder %s2740_s13, 31  ;;  %2383 = vmatpush.msk.msra.mxu1 %vm1280_vm1, %v1278_v16  ;;  %2518 = vmatpush.msk.msra.mxu3 %vm1280_vm1, %v1278_v16  ;;  %s270_s17 = sand.u32 1, %s2638_s25  }
  0x15   : > { %v2830_v18 = vshrl.u32 %v409_v17, 7  ;;  %v2832_v19 = vand.u32 127, %v409_v17 }
  0x16   : > { %s275_s14 = scalar_select %p274_p10, %s2740_s13, 31 }
  0x17   : > { %vm4094_vm2 = vcmp.eq.s32.totalorder %v2830_v18, %v2832_v19  ;;  %v2846_v22 = vadd.s32 8, %v2830_v18  ;;  %v2859_v26 = vadd.s32 16, %v2830_v18  ;;  %v2872_v30 = vadd.s32 24, %v2830_v18 }
  0x18   : > { %s2318_s15 = sshll.u32 %s275_s14, 3  ;;  %v2885_v34 = vadd.s32 32, %v2830_v18  ;;  %v2898_v38 = vadd.s32 40, %v2830_v18  ;;  %v2909_v42 = vadd.s32 48, %v2830_v18  ;;  %v2922_v47 = vadd.s32 56, %v2830_v18  ;;  %s2652_s14 = smov 120  }
  0x19   : > { %s2747_s18 = scalar_lea.vmem %s4058_s0, %s2318_s15  ;;  %vm4093_vm3 = vcmp.eq.s32.totalorder %v2846_v22, %v2832_v19  ;;  %vm4085_vm4 = vcmp.eq.s32.totalorder %v2859_v26, %v2832_v19  ;;  %vm4070_vm5 = vcmp.eq.s32.totalorder %v2872_v30, %v2832_v19  ;;  %v2935_v52 = vadd.s32 64, %v2830_v18  ;;  %s2604_s15 = scalar_lea.hbm %s4065_s7, 32 }
  0x1a   : > { %v2750_v0 = vld [vmem:[%s2747_s18 + $0x78] sm:$0xff]  ;;  %v2755_v1 = vld [vmem:[%s2747_s18 + $0x70] sm:$0xff]  ;;  %v2760_v2 = vld [vmem:[%s2747_s18 + $0x68] sm:$0xff]  ;;  %4120 = vst [vmem:[#allocation5_spill] sm:$0xff] %v2885_v34  ;;  %vm4069_vm6 = vcmp.eq.s32.totalorder %v2885_v34, %v2832_v19  ;;  %vm4068_vm7 = vcmp.eq.s32.totalorder %v2898_v38, %v2832_v19  ;;  %vm4067_vm8 = vcmp.eq.s32.totalorder %v2909_v42, %v2832_v19  ;;  %vm4066_vm9 = vcmp.eq.s32.totalorder %v2922_v47, %v2832_v19 }
  0x1b   : > { %2319 = vmatpush.xpose.msk.msra.mxu0 %vm295_vm0, %v2750_v0  ;;  %v2765_v3 = vld [vmem:[%s2747_s18 + $0x60] sm:$0xff]  ;;  %v2770_v4 = vld [vmem:[%s2747_s18 + $0x58] sm:$0xff]  ;;  %v289_v5 = vld [vmem:[%s2747_s18 + $0x50] sm:$0xff]  ;;  %2399 = vmatmul.msk.f32.vlgmr.msra.gmra.mxu3 %vm295_vm0, %v2750_v0  ;;  %4121 = vst [vmem:[#allocation6_spill] sm:$0xff] %v2898_v38  ;;  %vm4092_vm10 = vcmp.eq.s32.totalorder %v2935_v52, %v2832_v19  ;;  %v2948_v57 = vadd.s32 72, %v2830_v18  ;;  %v2961_v62 = vadd.s32 80, %v2830_v18 }
  0x1c   : > { %v288_v6 = vld [vmem:[%s2747_s18 + $0x48] sm:$0xff]  ;;  %v287_v7 = vld [vmem:[%s2747_s18 + $0x40] sm:$0xff]  ;;  %v286_v8 = vld [vmem:[%s2747_s18 + $0x38] sm:$0xff]  ;;  %4122 = vst [vmem:[#allocation7_spill] sm:$0xff] %v2909_v42 }
  0x1d   : > { %v285_v9 = vld [vmem:[%s2747_s18 + $0x30] sm:$0xff]  ;;  %v284_v10 = vld [vmem:[%s2747_s18 + $0x28] sm:$0xff]  ;;  %v283_v11 = vld [vmem:[%s2747_s18 + $0x20] sm:$0xff]  ;;  %4123 = vst [vmem:[#allocation8_spill] sm:$0xff] %v2922_v47  ;;  %vm4091_vm11 = vcmp.eq.s32.totalorder %v2948_v57, %v2832_v19  ;;  %vm4090_vm12 = vcmp.eq.s32.totalorder %v2961_v62, %v2832_v19 }
  0x1e   : > { %v282_v12 = vld [vmem:[%s2747_s18 + $0x18] sm:$0xff]  ;;  %v281_v13 = vld [vmem:[%s2747_s18 + $0x10] sm:$0xff]  ;;  %v280_v14 = vld [vmem:[%s2747_s18 + $0x8] sm:$0xff] }
  0x1f   : > { %2320 = vmatpush.xpose.msk.msra.mxu0 %vm295_vm0, %v2755_v1  ;;  %v279_v15 = vld [vmem:[%s2747_s18] sm:$0xff]  ;;  %s2316_s18 = sshll.u32 %s270_s17, 4 }
  0x20   : > { %2384 = vmatmul.msk.f32.vlgmr.msra.gmra.mxu1 %vm295_vm0, %v279_v15  ;;  %s272_s22 = scalar_lea.vmem [#allocation2], %s2316_s18 }
  0x21   : > { %s2247_s23 = sshll.u32 %s272_s22, 4  ;;  %s2248_s23 = int_to_ptr.vmem [resolvable:$true] %s2247_s23 }
  0x23   : > { %2321 = vmatpush.xpose.msk.msra.mxu0 %vm295_vm0, %v2760_v2 }
  0x27   : > { %2322 = vmatpush.xpose.msk.msra.mxu0 %vm295_vm0, %v2765_v3 }
  0x28   : > { %2385 = vmatmul.msk.f32.gmra.mxu1 %vm295_vm0, %v280_v14 }
  0x2b   : > { %2323 = vmatpush.xpose.msk.msra.mxu0 %vm295_vm0, %v2770_v4 }
  0x2f   : > { %2324 = vmatpush.xpose.msk.msra.mxu0 %vm295_vm0, %v289_v5 }
  0x30   : > { %2386 = vmatmul.msk.f32.gmra.mxu1 %vm295_vm0, %v281_v13 }
  0x33   : > { %2325 = vmatpush.xpose.msk.msra.mxu0 %vm295_vm0, %v288_v6 }
  0x37   : > { %2326 = vmatpush.xpose.msk.msra.mxu0 %vm295_vm0, %v287_v7 }
  0x38   : > { %2387 = vmatmul.msk.f32.gmra.mxu1 %vm295_vm0, %v282_v12 }
  0x3b   : > { %2327 = vmatpush.xpose.msk.msra.mxu0 %vm295_vm0, %v286_v8 }
  0x3f   : > { %2328 = vmatpush.xpose.msk.msra.mxu0 %vm295_vm0, %v285_v9 }
  0x40   : > { %2388 = vmatmul.msk.f32.gmra.mxu1 %vm295_vm0, %v283_v11 }
  0x43   : > { %2329 = vmatpush.xpose.msk.msra.mxu0 %vm295_vm0, %v284_v10 }
  0x47   : > { %2330 = vmatpush.xpose.msk.msra.mxu0 %vm295_vm0, %v283_v11 }
  0x48   : > { %2389 = vmatmul.msk.f32.gmra.mxu1 %vm295_vm0, %v284_v10 }
  0x4b   : > { %2331 = vmatpush.xpose.msk.msra.mxu0 %vm295_vm0, %v282_v12 }
  0x4f   : > { %2332 = vmatpush.xpose.msk.msra.mxu0 %vm295_vm0, %v281_v13 }
  0x50   : > { %2390 = vmatmul.msk.f32.gmra.mxu1 %vm295_vm0, %v285_v9 }
  0x53   : > { %2333 = vmatpush.xpose.msk.msra.mxu0 %vm295_vm0, %v280_v14 }
  0x57   : > { %2334 = vmatpush.xpose.msk.msra.mxu0 %vm295_vm0, %v279_v15 }
  0x58   : > { %2391 = vmatmul.msk.f32.gmra.mxu1 %vm295_vm0, %v286_v8 }
  0x5a   : > { %2335 = vmatmul.msk.f32.vlgmr.msra.gmra.mxu0 %vm295_vm0, %v279_v15 }
  0x60   : > { %2392 = vmatmul.msk.f32.gmra.mxu1 %vm295_vm0, %v287_v7 }
  0x62   : > { %2336 = vmatmul.msk.f32.gmra.mxu0 %vm295_vm0, %v280_v14 }
  0x68   : > { %2393 = vmatmul.msk.f32.gmra.mxu1 %vm295_vm0, %v288_v6 }
  0x6a   : > { %2337 = vmatmul.msk.f32.gmra.mxu0 %vm295_vm0, %v281_v13  ;;  %v3000_v13 = vadd.s32 104, %v2830_v18 }
  0x6c   : > { %vm4087_vm15 = vcmp.eq.s32.totalorder %v3000_v13, %v2832_v19 }
  0x70   : > { %2394 = vmatmul.msk.f32.gmra.mxu1 %vm295_vm0, %v289_v5 }
  0x72   : > { %2338 = vmatmul.msk.f32.gmra.mxu0 %vm295_vm0, %v282_v12 }
  0x78   : > { %2395 = vmatmul.msk.f32.gmra.mxu1 %vm295_vm0, %v2770_v4 }
  0x7a   : > { %2339 = vmatmul.msk.f32.gmra.mxu0 %vm295_vm0, %v283_v11 }
  0x80   : > { %2396 = vmatmul.msk.f32.gmra.mxu1 %vm295_vm0, %v2765_v3 }
  0x82   : > { %2340 = vmatmul.msk.f32.gmra.mxu0 %vm295_vm0, %v284_v10 }
  0x88   : > { %2397 = vmatmul.msk.f32.gmra.mxu1 %vm295_vm0, %v2760_v2 }
  0x8a   : > { %2341 = vmatmul.msk.f32.gmra.mxu0 %vm295_vm0, %v285_v9 }
  0x90   : > { %2398 = vmatmul.msk.f32.gmra.mxu1 %vm295_vm0, %v2755_v1 }
  0x92   : > { %2342 = vmatmul.msk.f32.gmra.mxu0 %vm295_vm0, %v286_v8  ;;  %v2987_v8 = vadd.s32 96, %v2830_v18 }
  0x94   : > { %vm4088_vm14 = vcmp.eq.s32.totalorder %v2987_v8, %v2832_v19 }
  0x9a   : > { %2343 = vmatmul.msk.f32.gmra.mxu0 %vm295_vm0, %v287_v7 }
  0x9d   : > { %v2911_v43 = vpop.f32.mrf.mxu1 }
  0xa2   : > { %2344 = vmatmul.msk.f32.gmra.mxu0 %vm295_vm0, %v288_v6 }
  0xa5   : > { %v2924_v48 = vpop.f32.mrf.mxu1 }
  0xaa   : > { %2345 = vmatmul.msk.f32.gmra.mxu0 %vm295_vm0, %v289_v5 }
  0xad   : > { %v2937_v53 = vpop.f32.mrf.mxu1 }
  0xb2   : > { %2346 = vmatmul.msk.f32.gmra.mxu0 %vm295_vm0, %v2770_v4 }
  0xb5   : > { %v2950_v58 = vpop.f32.mrf.mxu1 }
  0xba   : > { %2347 = vmatmul.msk.f32.gmra.mxu0 %vm295_vm0, %v2765_v3  ;;  %v2974_v3 = vadd.s32 88, %v2830_v18 }
  0xbc   : > { %vm4089_vm13 = vcmp.eq.s32.totalorder %v2974_v3, %v2832_v19 }
  0xbd   : > { %v2963_v63 = vpop.f32.mrf.mxu1 }
  0xc2   : > { %2348 = vmatmul.msk.f32.gmra.mxu0 %vm295_vm0, %v2760_v2 }
  0xc5   : > { %v2976_v4 = vpop.f32.mrf.mxu1 }
  0xca   : > { %2349 = vmatmul.msk.f32.gmra.mxu0 %vm295_vm0, %v2755_v1 }
  0xcd   : > { %v2991_v9 = vpop.f32.mrf.mxu1 }
  0xd2   : > { %2350 = vmatmul.msk.f32.gmra.mxu0 %vm295_vm0, %v2750_v0 }
  0xd5   : > { %v3004_v14 = vpop.f32.mrf.mxu1 }
  0xd7   : > { %v2839_v20 = vpop.f32.mrf.mxu0 }
  0xd8   : > { %v444_v21 = vsel %vm4094_vm2, %v2839_v20, 0.0 }
  0xd9   : > { %460 = vadd.xlane.f32.xlu0 %v444_v21 }
  0xdf   : > { %v2852_v23 = vpop.f32.mrf.mxu0 }
  0xe0   : > { %v445_v24 = vsel %vm4093_vm3, %v2852_v23, 0.0 }
  0xe1   : > { %462 = vadd.xlane.f32.xlu0 %v445_v24  ;;  %v492_v25 = vadd.f32 %v445_v24, %v444_v21  ;;  %v3013_v21 = vadd.s32 112, %v2830_v18  ;;  %v1325_v24 = vpop.f32.mrf.mxu1 }
  0xe3   : > { %vm4084_vm0 = vcmp.eq.s32.totalorder %v3013_v21, %v2832_v19 }
  0xe7   : > { %v2865_v27 = vpop.f32.mrf.mxu0 }
  0xe8   : > { %v446_v28 = vsel %vm4085_vm4, %v2865_v27, 0.0 }
  0xe9   : > { %464 = vadd.xlane.f32.xlu1 %v446_v28  ;;  %v493_v29 = vadd.f32 %v492_v25, %v446_v28 }
  0xef   : > { %v2878_v31 = vpop.f32.mrf.mxu0 }
  0xf0   : > { %v447_v32 = vsel %vm4070_vm5, %v2878_v31, 0.0 }
  0xf1   : > { %466 = vadd.xlane.f32.xlu1 %v447_v32  ;;  %v494_v33 = vadd.f32 %v493_v29, %v447_v32  ;;  %v3024_v32 = vadd.s32 120, %v2830_v18 }
  0xf3   : > { %vm4083_vm1 = vcmp.eq.s32.totalorder %v3024_v32, %v2832_v19 }
  0xf7   : > { %v2891_v35 = vpop.f32.mrf.mxu0 }
  0xf8   : > { %v448_v36 = vsel %vm4069_vm6, %v2891_v35, 0.0  ;;  %vm761_vm6 = vcmp.ge.s32.totalorder %v2832_v19, 64 }
  0xf9   : > { %468 = vadd.xlane.f32.xlu2 %v448_v36  ;;  %v495_v37 = vadd.f32 %v494_v33, %v448_v36  ;;  %v1328_v33 = vpop.f32.mrf.mxu1 }
  0xff   : > { %v2902_v39 = vpop.f32.mrf.mxu0 }
 0x100   : > { %v449_v40 = vsel %vm4068_vm7, %v2902_v39, 0.0  ;;  %vm710_vm7 = vcmp.ge.s32.totalorder %v2832_v19, 48 }
 0x101   : > { %470 = vadd.xlane.f32.xlu2 %v449_v40  ;;  %v496_v41 = vadd.f32 %v495_v37, %v449_v40 }
 0x107   : > { %v2915_v44 = vpop.f32.mrf.mxu0 }
 0x108   : > { %v450_v45 = vsel %vm4067_vm8, %v2915_v44, 0.0  ;;  %vm659_vm8 = vcmp.ge.s32.totalorder %v2832_v19, 32 }
 0x109   : > { %472 = vadd.xlane.f32.xlu0 %v450_v45  ;;  %v497_v46 = vadd.f32 %v496_v41, %v450_v45  ;;  %v1331_v41 = vpop.f32.mrf.mxu1 }
 0x10f   : > { %v2928_v49 = vpop.f32.mrf.mxu0 }
 0x110   : > { %v451_v50 = vsel %vm4066_vm9, %v2928_v49, 0.0  ;;  %vm609_vm9 = vcmp.ge.s32.totalorder %v2832_v19, 16 }
 0x111   : > { %474 = vadd.xlane.f32.xlu1 %v451_v50  ;;  %v498_v51 = vadd.f32 %v497_v46, %v451_v50  ;;  %v1334_v50 = vpop.f32.mrf.mxu1 }
 0x117   : > { %v2941_v54 = vpop.f32.mrf.mxu0 }
 0x118   : > { %v452_v55 = vsel %vm4092_vm10, %v2941_v54, 0.0 }
 0x119   : > { %476 = vadd.xlane.f32.xlu2 %v452_v55  ;;  %v499_v56 = vadd.f32 %v498_v51, %v452_v55 }
 0x11f   : > { %v2954_v59 = vpop.f32.mrf.mxu0 }
 0x120   : > { %v453_v60 = vsel %vm4091_vm11, %v2954_v59, 0.0 }
 0x121   : > { %478 = vadd.xlane.f32.xlu0 %v453_v60  ;;  %v500_v61 = vadd.f32 %v499_v56, %v453_v60  ;;  %v1337_v56 = vpop.f32.mrf.mxu1 }
 0x127   : > { %v2967_v0 = vpop.f32.mrf.mxu0 }
 0x128   : > { %v454_v1 = vsel %vm4090_vm12, %v2967_v0, 0.0 }
 0x129   : > { %480 = vadd.xlane.f32.xlu1 %v454_v1  ;;  %v501_v2 = vadd.f32 %v500_v61, %v454_v1 }
 0x12f   : > { %v2980_v5 = vpop.f32.mrf.mxu0 }
 0x130   : > { %v455_v6 = vsel %vm4089_vm13, %v2980_v5, 0.0 }
 0x131   : > { %482 = vadd.xlane.f32.xlu2 %v455_v6  ;;  %v502_v7 = vadd.f32 %v501_v2, %v455_v6  ;;  %v3051_v6 = vmul.f32 2.0, %v2891_v35 }
 0x137   : > { %v2993_v10 = vpop.f32.mrf.mxu0 }
 0x138   : > { %v456_v11 = vsel %vm4088_vm14, %v2993_v10, 0.0 }
 0x139   : > { %484 = vadd.xlane.f32.xlu0 %v456_v11  ;;  %v503_v12 = vadd.f32 %v502_v7, %v456_v11  ;;  %v1340_v11 = vpop.f32.mrf.mxu1 }
 0x13f   : > { %v3006_v15 = vpop.f32.mrf.mxu0 }
 0x140   : > { %v457_v16 = vsel %vm4087_vm15, %v3006_v15, 0.0 }
 0x141   : > { %486 = vadd.xlane.f32.xlu1 %v457_v16  ;;  %v504_v17 = vadd.f32 %v503_v12, %v457_v16 }
 0x147   : > { %v3017_v25 = vpop.f32.mrf.mxu0 }
 0x148   : > { %v458_v28 = vsel %vm4084_vm0, %v3017_v25, 0.0 }
 0x149   : > { %488 = vadd.xlane.f32.xlu2 %v458_v28  ;;  %v505_v29 = vadd.f32 %v504_v17, %v458_v28  ;;  %v1346_v17 = vpop.f32.mrf.mxu3 }
 0x14a   : > { %1413 = vmatpush.msra.mxu2 %v1346_v17 }
 0x14c   : > { %v3044_v61 = vpop.xlane.xlu0 %460 }
 0x14f   : > { %v3028_v36 = vpop.f32.mrf.mxu0 }
 0x150   : > { %v459_v37 = vsel %vm4083_vm1, %v3028_v36, 0.0 }
 0x151   : > { %v506_v40 = vadd.f32 %v505_v29, %v459_v37  ;;  %490 = vadd.xlane.f32.xlu0 %v459_v37  ;;  %v3068_v29 = vmul.f32 2.0, %v2902_v39 }
 0x153   : > { %v507_v45 = vrot.slane %v506_v40, 4 }
 0x154   : > { %v3065_v35 = vpop.xlane.xlu0 %462 }
 0x155   : > { %v508_v46 = vadd.f32 %v507_v45, %v506_v40  ;;  %v1343_v40 = vpop.f32.mrf.mxu1 }
 0x156   : > { %1414 = vmatpush.msra.mxu2 %v1343_v40 }
 0x157   : > { %v509_v51 = vrot.slane %v508_v46, 2 }
 0x158   : > { %1415 = vmatpush.msra.mxu2 %v1340_v11 }
 0x159   : > { %v510_v55 = vadd.f32 %v509_v51, %v508_v46  ;;  %v3081_v51 = vmul.f32 2.0, %v2915_v44 }
 0x15a   : > { %1365 = vrot.lane.b32.xlu1 %v2911_v43, %s2648_s21  ;;  %1416 = vmatpush.msra.mxu2 %v1337_v56 }
 0x15b   : > { %v511_v60 = vrot.slane %v510_v55, 1 }
 0x15c   : > { %v3062_v16 = vpop.xlane.xlu1 %464  ;;  %1417 = vmatpush.msra.mxu2 %v1334_v50 }
 0x15d   : > { %v3048_v1 = vadd.f32 %v511_v60, %v510_v55  ;;  %v543_v60 = vmul.f32 2.0, %v3017_v25 }
 0x15e   : > { %1418 = vmatpush.msra.mxu2 %v1331_v41 }
 0x160   : > { %1419 = vmatpush.msra.mxu2 %v1328_v33 }
 0x161   : > { %1367 = vrot.lane.b32.xlu2 %v2924_v48, %s2648_s21 }
 0x162   : > { %1373 = vrot.lane.b32.xlu1 %v2963_v63, %s2648_s21  ;;  %1420 = vmatpush.msra.mxu2 %v1325_v24 }
 0x164   : > { %v3078_v46 = vpop.xlane.xlu1 %466  ;;  %1421 = vmatpush.msra.mxu2 %v3004_v14 }
 0x165   : > { %1369 = vrot.lane.b32.xlu0 %v2937_v53, %s2648_s21 }
 0x166   : > { %1422 = vmatpush.msra.mxu2 %v2991_v9 }
 0x168   : > { %1423 = vmatpush.msra.mxu2 %v2976_v4 }
 0x169   : > { %1371 = vrot.lane.b32.xlu2 %v2950_v58, %s2648_s21 }
 0x16a   : > { %1379 = vrot.lane.b32.xlu1 %v3004_v14, %s2648_s21  ;;  %1424 = vmatpush.msra.mxu2 %v2963_v63  ;;  %v3117_v63 = vmul.f32 2.0, %v2954_v59 }
 0x16c   : > { %v469_v2 = vpop.xlane.xlu2 %468  ;;  %1425 = vmatpush.msra.mxu2 %v2950_v58 }
 0x16d   : > { %v3054_v7 = vadd.f32 %v3048_v1, %v469_v2  ;;  %1375 = vrot.lane.b32.xlu0 %v2976_v4, %s2648_s21 }
 0x16e   : > { %1426 = vmatpush.msra.mxu2 %v2937_v53 }
 0x16f   : > { %v549_v12 = vsub.f32 %v3054_v7, %v3051_v6 }
 0x170   : > { %1427 = vmatpush.msra.mxu2 %v2924_v48  ;;  %v2649_v48 = vmov 0  }
 0x171   : > { %1377 = vrot.lane.b32.xlu2 %v2991_v9, %s2648_s21  ;;  %v610_v59 = vsel %vm609_vm9, 1, %v2649_v48  ;;  %vm863_vm9 = vcmp.ge.s32.totalorder %v2832_v19, 96 }
 0x172   : > { %1385 = vrot.lane.b32.xlu1 %v1331_v41, %s2648_s21  ;;  %1428 = vmatpush.msra.mxu2 %v2911_v43  ;;  %v3125_v41 = vmul.f32 2.0, %v2967_v0  ;;  %v541_v43 = vmul.f32 2.0, %v2993_v10  ;;  %v515_v10 = vadd.f32 %v3048_v1, %v3062_v16 }
 0x174   : > { %v471_v28 = vpop.xlane.xlu2 %470 }
 0x175   : > { %v3071_v37 = vadd.f32 %v3048_v1, %v471_v28  ;;  %1381 = vrot.lane.b32.xlu0 %v1325_v24, %s2648_s21  ;;  %v3105_v24 = vmul.f32 2.0, %v2941_v54  ;;  %v3136_v28 = vmul.f32 2.0, %v2980_v5 }
 0x177   : > { %v550_v45 = vsub.f32 %v3071_v37, %v3068_v29 }
 0x179   : > { %1383 = vrot.lane.b32.xlu2 %v1328_v33, %s2648_s21  ;;  %v3181_v25 = vmax.f32 %v550_v45, 0.0 }
 0x17a   : > { %1391 = vrot.lane.b32.xlu1 %v1340_v11, %s2648_s21  ;;  %v3091_v11 = vmul.f32 2.0, %v2928_v49 }
 0x17b   : > { %4124 = vst [vmem:[#allocation9_spill] sm:$0xff] %v3181_v25 }
 0x17c   : > { %v473_v39 = vpop.xlane.xlu0 %472 }
 0x17d   : > { %v3084_v55 = vadd.f32 %v3048_v1, %v473_v39  ;;  %1387 = vrot.lane.b32.xlu0 %v1334_v50, %s2648_s21  ;;  %v711_v39 = vsel %vm710_vm7, 1, %v2649_v48  ;;  %vm914_vm7 = vcmp.ge.s32.totalorder %v2832_v19, 112 }
 0x181   : > { %1389 = vrot.lane.b32.xlu2 %v1337_v56, %s2648_s21  ;;  %v660_v56 = vsel %vm659_vm8, 1, %v2649_v48  ;;  %vm812_vm8 = vcmp.ge.s32.totalorder %v2832_v19, 80 }
 0x182   : > { %v813_v9 = vsel %vm812_vm8, 1, %v2649_v48 }
 0x184   : > { %v475_v2 = vpop.xlane.xlu1 %474 }
 0x185   : > { %v3094_v44 = vadd.f32 %v3048_v1, %v475_v2  ;;  %1393 = vrot.lane.b32.xlu0 %v1343_v40, %s2648_s21  ;;  %v661_v40 = vadd.s32 %v660_v56, %v610_v59  ;;  %v864_v56 = vsel %vm863_vm9, 1, %v2649_v48 }
 0x189   : > { %1395 = vrot.lane.b32.xlu2 %v1346_v17, %s2648_s21 }
 0x18c   : > { %v477_v49 = vpop.xlane.xlu2 %476 }
 0x18d   : > { %v3108_v33 = vadd.f32 %v3048_v1, %v477_v49  ;;  %v712_v49 = vadd.s32 %v711_v39, %v661_v40  ;;  %v514_v40 = vadd.f32 %v3048_v1, %v3065_v35  ;;  %v529_v35 = vmul.f32 2.0, %v2839_v20 }
 0x18f   : > { %v4131_v37 = vsub.f32 %v3108_v33, %v3105_v24 }
 0x191   : > { %v3218_v45 = vmax.f32 %v4131_v37, 0.0 }
 0x194   : > { %v479_v4 = vpop.xlane.xlu0 %478 }
 0x195   : > { %v3120_v54 = vadd.f32 %v3048_v1, %v479_v4  ;;  %v762_v4 = vsel %vm761_vm6, 1, %v2649_v48 }
 0x196   : > { %v763_v14 = vadd.s32 %v762_v4, %v712_v49  ;;  %v531_v4 = vmul.f32 2.0, %v2865_v27 }
 0x197   : > { %v4130_v6 = vsub.f32 %v3120_v54, %v3117_v63 }
 0x198   : > { %v814_v59 = vadd.s32 %v813_v9, %v763_v14  ;;  %v513_v14 = vadd.f32 %v3048_v1, %v3044_v61  ;;  %v530_v9 = vmul.f32 2.0, %v2852_v23  ;;  %v547_v50 = vsub.f32 %v515_v10, %v531_v4 }
 0x199   : > { %v3209_v7 = vmax.f32 %v4130_v6, 0.0 }
 0x19a   : > { %v865_v49 = vadd.s32 %v864_v56, %v814_v59  ;;  %v546_v16 = vsub.f32 %v514_v40, %v530_v9  ;;  %v545_v56 = vsub.f32 %v513_v14, %v529_v35  ;;  %v3168_v23 = vmax.f32 %v547_v50, 0.0 }
 0x19b   : > { %v544_v50 = vmul.f32 2.0, %v3028_v36  ;;  %v4126_v40 = vsub.f32 %v3084_v55, %v3081_v51 }
 0x19c   : > { %v481_v58 = vpop.xlane.xlu1 %480  ;;  %v3166_v61 = vmax.f32 %v546_v16, 0.0 }
 0x19d   : > { %v3128_v53 = vadd.f32 %v3048_v1, %v481_v58  ;;  %v3192_v10 = vmax.f32 %v4126_v40, 0.0 }
 0x19f   : > { %4127 = vst [vmem:[#allocation11_spill] sm:$0xff] %v3192_v10 }
 0x1a4   : > { %v483_v17 = vpop.xlane.xlu2 %482 }
 0x1a5   : > { %v3139_v0 = vadd.f32 %v3048_v1, %v483_v17 }
 0x1a7   : > { %v556_v2 = vsub.f32 %v3139_v0, %v3136_v28  ;;  %v542_v0 = vmul.f32 2.0, %v3006_v15  ;;  %v915_v15 = vsel %vm914_vm7, 1, %v2649_v48 }
 0x1ac   : > { %v485_v58 = vpop.xlane.xlu0 %484 }
 0x1ad   : > { %v525_v5 = vadd.f32 %v3048_v1, %v485_v58 }
 0x1af   : > { %v557_v17 = vsub.f32 %v525_v5, %v541_v43  ;;  %v516_v43 = vadd.f32 %v3048_v1, %v3078_v46  ;;  %v532_v5 = vmul.f32 2.0, %v2878_v31  ;;  %v3175_v31 = vmax.f32 %v545_v56, 0.0 }
 0x1b1   : > { %v548_v59 = vsub.f32 %v516_v43, %v532_v5 }
 0x1b3   : > { %v3173_v20 = vmax.f32 %v548_v59, 0.0 }
 0x1b4   : > { %v487_v28 = vpop.xlane.xlu1 %486 }
 0x1b5   : > { %v526_v39 = vadd.f32 %v3048_v1, %v487_v28  ;;  %v3163_v28 = vadd.s32 %v915_v15, %v865_v49 }
 0x1b7   : > { %v558_v58 = vsub.f32 %v526_v39, %v542_v0  ;;  %vm4082_vm6 = vcmp.eq.s32.totalorder %v3163_v28, 0  ;;  %vm4071_vm8 = vcmp.eq.s32.totalorder %v3163_v28, 1  ;;  %vm4073_vm9 = vcmp.eq.s32.totalorder %v3163_v28, 2 }
 0x1b8   : > { %v3187_v0 = vmax.f32 %v549_v12, 0.0  ;;  %v4128_v39 = vsub.f32 %v3094_v44, %v3091_v11  ;;  %v934_v29 = vsel %vm4082_vm6, %v3166_v61, inf  ;;  %v935_v36 = vsel %vm4071_vm8, %v3168_v23, inf }
 0x1b9   : > { %vm4072_vm7 = vcmp.eq.s32.totalorder %v3163_v28, 3  ;;  %v936_v12 = vsel %vm4071_vm8, %v3173_v20, inf  ;;  %vm4081_vm5 = vcmp.eq.s32.totalorder %v3163_v28, 4  ;;  %v933_v51 = vsel %vm4082_vm6, %v3175_v31, inf }
 0x1ba   : > { %4125 = vst [vmem:[#allocation10_spill] sm:$0xff] %v3187_v0  ;;  %v3197_v49 = vmax.f32 %v4128_v39, 0.0  ;;  %v938_v55 = vsel %vm4073_vm9, %v3181_v25, inf  ;;  %v3231_v44 = vmax.f32 %v556_v2, 0.0  ;;  %v3233_v63 = vmax.f32 %v558_v58, 0.0 }
 0x1bb   : > { %v937_v24 = vsel %vm4073_vm9, %v3187_v0, inf  ;;  %v939_v33 = vsel %vm4072_vm7, %v3192_v10, inf  ;;  %vm4080_vm8 = vcmp.eq.s32.totalorder %v3163_v28, 5  ;;  %v3250_v2 = vmax.f32 %v557_v17, 0.0 }
 0x1bc   : > { %v489_v46 = vpop.xlane.xlu2 %488  ;;  %4129 = vst [vmem:[#allocation12_spill] sm:$0xff] %v3197_v49  ;;  %v940_v54 = vsel %vm4072_vm7, %v3197_v49, inf  ;;  %v950_v9 = vmin.f32 %v934_v29, %v938_v55  ;;  %v941_v4 = vsel %vm4081_vm5, %v3218_v45, inf  ;;  %vm4079_vm7 = vcmp.eq.s32.totalorder %v3163_v28, 6 }
 0x1bd   : > { %v527_v27 = vadd.f32 %v3048_v1, %v489_v46  ;;  %vm4086_vm9 = vcmp.eq.s32.totalorder %v3163_v28, 7  ;;  %v944_v17 = vsel %vm4080_vm8, %v3231_v44, inf  ;;  %v951_v35 = vmin.f32 %v935_v36, %v939_v33 }
 0x1be   : > { %v952_v5 = vmin.f32 %v936_v12, %v940_v54  ;;  %v949_v59 = vmin.f32 %v933_v51, %v937_v24  ;;  %v945_v56 = vsel %vm4079_vm7, %v3250_v2, inf }
 0x1bf   : > { %v559_v48 = vsub.f32 %v527_v27, %v543_v60  ;;  %v4132_v60 = vsub.f32 %v3128_v53, %v3125_v41  ;;  %v3248_v53 = vsel %vm4081_vm5, %v3209_v7, inf }
 0x1c0   : > { %v954_v16 = vmin.f32 %v950_v9, %v3248_v53  ;;  %v956_v40 = vmin.f32 %v952_v5, %v944_v17 }
 0x1c1   : > { %v3229_v11 = vmax.f32 %v4132_v60, 0.0  ;;  %v3252_v43 = vmax.f32 %v559_v48, 0.0 }
 0x1c3   : > { %v943_v15 = vsel %vm4080_vm8, %v3229_v11, inf  ;;  %v947_v46 = vsel %vm4086_vm9, %v3252_v43, inf }
 0x1c4   : > { %v491_v41 = vpop.xlane.xlu0 %490  ;;  %v955_v48 = vmin.f32 %v951_v35, %v943_v15 }
 0x1c5   : > { %v528_v14 = vadd.f32 %v3048_v1, %v491_v41  ;;  %v3269_v1 = vsel %vm4079_vm7, %v3233_v63, inf }
 0x1c6   : > { %v958_v39 = vmin.f32 %v954_v16, %v3269_v1  ;;  %v959_v37 = vmin.f32 %v955_v48, %v947_v46 }
 0x1c7   : > { %v560_v58 = vsub.f32 %v528_v14, %v544_v50  ;;  %v953_v50 = vmin.f32 %v949_v59, %v941_v4 }
 0x1c9   : > { %v3278_v27 = vmax.f32 %v560_v58, 0.0  ;;  %v957_v41 = vmin.f32 %v953_v50, %v945_v56 }
 0x1cb   : > { %v948_v6 = vsel %vm4086_vm9, %v3278_v27, inf  ;;  %v961_v9 = vmin.f32 %v957_v41, %v958_v39 }
 0x1cc   : > { %v960_v60 = vmin.f32 %v956_v40, %v948_v6 }
 0x1ce   : > { %v962_v14 = vmin.f32 %v959_v37, %v960_v60 }
 0x1d0   : > { %v963_v49 = vmin.f32 %v961_v9, %v962_v14 }
 0x1d2   : > { %v964_v47 = vrot.slane %v963_v49, 4 }
 0x1d4   : > { %v965_v10 = vmin.f32 %v963_v49, %v964_v47 }
 0x1d6   : > { %v966_v42 = vrot.slane %v965_v10, 2 }
 0x1d8   : > { %v967_v58 = vmin.f32 %v965_v10, %v966_v42 }
 0x1da   : > { %v968_v25 = vrot.slane %v967_v58, 1 }
 0x1dc   : > { %v969_v35 = vmin.f32 %v967_v58, %v968_v25 }
 0x1de   : > { %vm970_vm7 = vcmp.le.f32.partialorder %v933_v51, %v969_v35  ;;  %vm971_vm8 = vcmp.le.f32.partialorder %v934_v29, %v969_v35  ;;  %vm972_vm5 = vcmp.le.f32.partialorder %v935_v36, %v969_v35  ;;  %vm973_vm6 = vcmp.le.f32.partialorder %v936_v12, %v969_v35 }
 0x1df   : > { %vm974_vm1 = vcmp.le.f32.partialorder %v937_v24, %v969_v35  ;;  %vm975_vm0 = vcmp.le.f32.partialorder %v938_v55, %v969_v35  ;;  %vm976_vm4 = vcmp.le.f32.partialorder %v939_v33, %v969_v35  ;;  %vm977_vm9 = vcmp.le.f32.partialorder %v940_v54, %v969_v35 }
 0x1e0   : > { %v986_v5 = vsel %vm970_vm7, inf, %v933_v51  ;;  %v987_v16 = vsel %vm971_vm8, inf, %v934_v29  ;;  %v988_v59 = vsel %vm972_vm5, inf, %v935_v36  ;;  %v989_v48 = vsel %vm973_vm6, inf, %v936_v12 }
 0x1e1   : > { %v990_v40 = vsel %vm974_vm1, inf, %v937_v24  ;;  %v991_v39 = vsel %vm975_vm0, inf, %v938_v55  ;;  %v992_v50 = vsel %vm976_vm4, inf, %v939_v33  ;;  %v993_v47 = vsel %vm977_vm9, inf, %v940_v54 }
 0x1e2   : > { %vm978_vm15 = vcmp.le.f32.partialorder %v941_v4, %v969_v35  ;;  %vm979_vm14 = vcmp.le.f32.partialorder %v3248_v53, %v969_v35  ;;  %vm980_vm13 = vcmp.le.f32.partialorder %v943_v15, %v969_v35  ;;  %vm981_vm12 = vcmp.le.f32.partialorder %v944_v17, %v969_v35 }
 0x1e3   : > { %vm982_vm11 = vcmp.le.f32.partialorder %v945_v56, %v969_v35  ;;  %vm983_vm10 = vcmp.le.f32.partialorder %v3269_v1, %v969_v35  ;;  %vm984_vm3 = vcmp.le.f32.partialorder %v947_v46, %v969_v35  ;;  %vm985_vm2 = vcmp.le.f32.partialorder %v948_v6, %v969_v35 }
 0x1e4   : > { %v1002_v42 = vmin.f32 %v986_v5, %v990_v40  ;;  %v1003_v25 = vmin.f32 %v987_v16, %v991_v39  ;;  %v1004_v10 = vmin.f32 %v988_v59, %v992_v50  ;;  %v1005_v49 = vmin.f32 %v989_v48, %v993_v47 }
 0x1e5   : > { %v994_v29 = vsel %vm978_vm15, inf, %v941_v4  ;;  %v995_v36 = vsel %vm979_vm14, inf, %v3248_v53  ;;  %v996_v12 = vsel %vm980_vm13, inf, %v943_v15  ;;  %v997_v51 = vsel %vm981_vm12, inf, %v944_v17 }
 0x1e6   : > { %v1006_v55 = vmin.f32 %v1002_v42, %v994_v29  ;;  %v1007_v24 = vmin.f32 %v1003_v25, %v995_v36  ;;  %v1008_v33 = vmin.f32 %v1004_v10, %v996_v12  ;;  %v1009_v54 = vmin.f32 %v1005_v49, %v997_v51 }
 0x1e7   : > { %v998_v37 = vsel %vm982_vm11, inf, %v945_v56  ;;  %v999_v60 = vsel %vm983_vm10, inf, %v3269_v1  ;;  %v1000_v41 = vsel %vm984_vm3, inf, %v947_v46  ;;  %v1001_v14 = vsel %vm985_vm2, inf, %v948_v6 }
 0x1e8   : > { %v1010_v9 = vmin.f32 %v1006_v55, %v998_v37  ;;  %v1011_v4 = vmin.f32 %v1007_v24, %v999_v60  ;;  %v1012_v58 = vmin.f32 %v1008_v33, %v1000_v41  ;;  %v1013_v53 = vmin.f32 %v1009_v54, %v1001_v14 }
 0x1ea   : > { %v1014_v15 = vmin.f32 %v1010_v9, %v1011_v4  ;;  %v1015_v17 = vmin.f32 %v1012_v58, %v1013_v53 }
 0x1ec   : > { %v1016_v42 = vmin.f32 %v1014_v15, %v1015_v17 }
 0x1ee   : > { %v1017_v25 = vrot.slane %v1016_v42, 4 }
 0x1f0   : > { %v1018_v10 = vmin.f32 %v1016_v42, %v1017_v25 }
 0x1f2   : > { %v1019_v49 = vrot.slane %v1018_v10, 2 }
 0x1f4   : > { %v1020_v38 = vmin.f32 %v1018_v10, %v1019_v49 }
 0x1f6   : > { %v1021_v56 = vrot.slane %v1020_v38, 1 }
 0x1f8   : > { %v1022_v0 = vmin.f32 %v1020_v38, %v1021_v56 }
 0x1fa   : > { %vm1023_vm4 = vcmp.le.f32.partialorder %v986_v5, %v1022_v0  ;;  %vm1024_vm5 = vcmp.le.f32.partialorder %v987_v16, %v1022_v0  ;;  %vm1025_vm10 = vcmp.le.f32.partialorder %v988_v59, %v1022_v0  ;;  %vm1026_vm11 = vcmp.le.f32.partialorder %v989_v48, %v1022_v0 }
 0x1fb   : > { %vm1027_vm3 = vcmp.le.f32.partialorder %v990_v40, %v1022_v0  ;;  %vm1028_vm12 = vcmp.le.f32.partialorder %v991_v39, %v1022_v0  ;;  %vm1029_vm2 = vcmp.le.f32.partialorder %v992_v50, %v1022_v0  ;;  %vm1030_vm13 = vcmp.le.f32.partialorder %v993_v47, %v1022_v0 }
 0x1fc   : > { %v1039_v1 = vsel %vm1023_vm4, inf, %v986_v5  ;;  %v1040_v46 = vsel %vm1024_vm5, inf, %v987_v16  ;;  %v1041_v6 = vsel %vm1025_vm10, inf, %v988_v59  ;;  %v1042_v35 = vsel %vm1026_vm11, inf, %v989_v48 }
 0x1fd   : > { %v1043_v55 = vsel %vm1027_vm3, inf, %v990_v40  ;;  %v1044_v24 = vsel %vm1028_vm12, inf, %v991_v39  ;;  %v1045_v33 = vsel %vm1029_vm2, inf, %v992_v50  ;;  %v1046_v54 = vsel %vm1030_vm13, inf, %v993_v47 }
 0x1fe   : > { %vm1031_vm14 = vcmp.le.f32.partialorder %v994_v29, %v1022_v0  ;;  %vm1032_vm15 = vcmp.le.f32.partialorder %v995_v36, %v1022_v0  ;;  %vm1033_vm0 = vcmp.le.f32.partialorder %v996_v12, %v1022_v0  ;;  %vm1034_vm1 = vcmp.le.f32.partialorder %v997_v51, %v1022_v0 }
 0x1ff   : > { %vm1035_vm6 = vcmp.le.f32.partialorder %v998_v37, %v1022_v0  ;;  %vm1036_vm8 = vcmp.le.f32.partialorder %v999_v60, %v1022_v0  ;;  %vm1037_vm9 = vcmp.le.f32.partialorder %v1000_v41, %v1022_v0  ;;  %vm1038_vm7 = vcmp.le.f32.partialorder %v1001_v14, %v1022_v0 }
 0x200   : > { %v1055_v38 = vmin.f32 %v1039_v1, %v1043_v55  ;;  %v1056_v9 = vmin.f32 %v1040_v46, %v1044_v24  ;;  %v1057_v4 = vmin.f32 %v1041_v6, %v1045_v33  ;;  %v1058_v58 = vmin.f32 %v1042_v35, %v1046_v54 }
 0x201   : > { %v1047_v5 = vsel %vm1031_vm14, inf, %v994_v29  ;;  %v1048_v16 = vsel %vm1032_vm15, inf, %v995_v36  ;;  %v1049_v59 = vsel %vm1033_vm0, inf, %v996_v12  ;;  %v1050_v48 = vsel %vm1034_vm1, inf, %v997_v51 }
 0x202   : > { %v1059_v40 = vmin.f32 %v1055_v38, %v1047_v5  ;;  %v1060_v39 = vmin.f32 %v1056_v9, %v1048_v16  ;;  %v1061_v50 = vmin.f32 %v1057_v4, %v1049_v59  ;;  %v1062_v47 = vmin.f32 %v1058_v58, %v1050_v48 }
 0x203   : > { %v1051_v53 = vsel %vm1035_vm6, inf, %v998_v37  ;;  %v1052_v15 = vsel %vm1036_vm8, inf, %v999_v60  ;;  %v1053_v17 = vsel %vm1037_vm9, inf, %v1000_v41  ;;  %v1054_v42 = vsel %vm1038_vm7, inf, %v1001_v14 }
 0x204   : > { %v1063_v25 = vmin.f32 %v1059_v40, %v1051_v53  ;;  %v1064_v10 = vmin.f32 %v1060_v39, %v1052_v15  ;;  %v1065_v49 = vmin.f32 %v1061_v50, %v1053_v17  ;;  %v1066_v56 = vmin.f32 %v1062_v47, %v1054_v42 }
 0x206   : > { %v1067_v29 = vmin.f32 %v1063_v25, %v1064_v10  ;;  %v1068_v36 = vmin.f32 %v1065_v49, %v1066_v56 }
 0x208   : > { %v1069_v12 = vmin.f32 %v1067_v29, %v1068_v36 }
 0x20a   : > { %v1070_v51 = vrot.slane %v1069_v12, 4 }
 0x20c   : > { %v1071_v38 = vmin.f32 %v1069_v12, %v1070_v51 }
 0x20e   : > { %v1072_v9 = vrot.slane %v1071_v38, 2 }
 0x210   : > { %v1073_v4 = vmin.f32 %v1071_v38, %v1072_v9 }
 0x212   : > { %v1074_v58 = vrot.slane %v1073_v4, 1 }
 0x214   : > { %v1075_v34 = vmin.f32 %v1073_v4, %v1074_v58 }
 0x216   : > { %vm1076_vm4 = vcmp.le.f32.partialorder %v1039_v1, %v1075_v34  ;;  %vm1077_vm5 = vcmp.le.f32.partialorder %v1040_v46, %v1075_v34  ;;  %vm1078_vm10 = vcmp.le.f32.partialorder %v1041_v6, %v1075_v34  ;;  %vm1079_vm11 = vcmp.le.f32.partialorder %v1042_v35, %v1075_v34 }
 0x217   : > { %vm1080_vm3 = vcmp.le.f32.partialorder %v1043_v55, %v1075_v34  ;;  %vm1081_vm12 = vcmp.le.f32.partialorder %v1044_v24, %v1075_v34  ;;  %vm1082_vm2 = vcmp.le.f32.partialorder %v1045_v33, %v1075_v34  ;;  %vm1083_vm13 = vcmp.le.f32.partialorder %v1046_v54, %v1075_v34 }
 0x218   : > { %v1092_v0 = vsel %vm1076_vm4, inf, %v1039_v1  ;;  %v1093_v37 = vsel %vm1077_vm5, inf, %v1040_v46  ;;  %v1094_v60 = vsel %vm1078_vm10, inf, %v1041_v6  ;;  %v1095_v41 = vsel %vm1079_vm11, inf, %v1042_v35 }
 0x219   : > { %v1096_v14 = vsel %vm1080_vm3, inf, %v1043_v55  ;;  %v1097_v40 = vsel %vm1081_vm12, inf, %v1044_v24  ;;  %v1098_v39 = vsel %vm1082_vm2, inf, %v1045_v33  ;;  %v1099_v50 = vsel %vm1083_vm13, inf, %v1046_v54 }
 0x21a   : > { %vm1084_vm14 = vcmp.le.f32.partialorder %v1047_v5, %v1075_v34  ;;  %vm1085_vm15 = vcmp.le.f32.partialorder %v1048_v16, %v1075_v34  ;;  %vm1086_vm0 = vcmp.le.f32.partialorder %v1049_v59, %v1075_v34  ;;  %vm1087_vm1 = vcmp.le.f32.partialorder %v1050_v48, %v1075_v34 }
 0x21b   : > { %vm1088_vm6 = vcmp.le.f32.partialorder %v1051_v53, %v1075_v34  ;;  %vm1089_vm8 = vcmp.le.f32.partialorder %v1052_v15, %v1075_v34  ;;  %vm1090_vm9 = vcmp.le.f32.partialorder %v1053_v17, %v1075_v34  ;;  %vm1091_vm7 = vcmp.le.f32.partialorder %v1054_v42, %v1075_v34 }
 0x21c   : > { %v1108_v47 = vmin.f32 %v1092_v0, %v1096_v14  ;;  %v1109_v25 = vmin.f32 %v1093_v37, %v1097_v40  ;;  %v1110_v10 = vmin.f32 %v1094_v60, %v1098_v39  ;;  %v1111_v49 = vmin.f32 %v1095_v41, %v1099_v50 }
 0x21d   : > { %v1100_v1 = vsel %vm1084_vm14, inf, %v1047_v5  ;;  %v1101_v46 = vsel %vm1085_vm15, inf, %v1048_v16  ;;  %v1102_v6 = vsel %vm1086_vm0, inf, %v1049_v59  ;;  %v1103_v35 = vsel %vm1087_vm1, inf, %v1050_v48 }
 0x21e   : > { %v1112_v55 = vmin.f32 %v1108_v47, %v1100_v1  ;;  %v1113_v24 = vmin.f32 %v1109_v25, %v1101_v46  ;;  %v1114_v33 = vmin.f32 %v1110_v10, %v1102_v6  ;;  %v1115_v54 = vmin.f32 %v1111_v49, %v1103_v35 }
 0x21f   : > { %v1104_v56 = vsel %vm1088_vm6, inf, %v1051_v53  ;;  %v1105_v29 = vsel %vm1089_vm8, inf, %v1052_v15  ;;  %v1106_v36 = vsel %vm1090_vm9, inf, %v1053_v17  ;;  %v1107_v12 = vsel %vm1091_vm7, inf, %v1054_v42 }
 0x220   : > { %v1116_v51 = vmin.f32 %v1112_v55, %v1104_v56  ;;  %v1117_v38 = vmin.f32 %v1113_v24, %v1105_v29  ;;  %v1118_v9 = vmin.f32 %v1114_v33, %v1106_v36  ;;  %v1119_v4 = vmin.f32 %v1115_v54, %v1107_v12 }
 0x222   : > { %v1120_v5 = vmin.f32 %v1116_v51, %v1117_v38  ;;  %v1121_v16 = vmin.f32 %v1118_v9, %v1119_v4 }
 0x224   : > { %v1122_v59 = vmin.f32 %v1120_v5, %v1121_v16 }
 0x226   : > { %v1123_v48 = vrot.slane %v1122_v59, 4 }
 0x228   : > { %v1124_v58 = vmin.f32 %v1122_v59, %v1123_v48 }
 0x22a   : > { %v1125_v47 = vrot.slane %v1124_v58, 2 }
 0x22c   : > { %v1126_v25 = vmin.f32 %v1124_v58, %v1125_v47 }
 0x22e   : > { %v1127_v10 = vrot.slane %v1126_v25, 1 }
 0x230   : > { %v1128_v49 = vmin.f32 %v1126_v25, %v1127_v10 }
 0x232   : > { %vm1129_vm4 = vcmp.le.f32.partialorder %v1092_v0, %v1128_v49  ;;  %vm1130_vm5 = vcmp.le.f32.partialorder %v1093_v37, %v1128_v49  ;;  %vm1131_vm10 = vcmp.le.f32.partialorder %v1094_v60, %v1128_v49  ;;  %vm1132_vm11 = vcmp.le.f32.partialorder %v1095_v41, %v1128_v49 }
 0x233   : > { %vm1133_vm3 = vcmp.le.f32.partialorder %v1096_v14, %v1128_v49  ;;  %vm1134_vm12 = vcmp.le.f32.partialorder %v1097_v40, %v1128_v49  ;;  %vm1135_vm2 = vcmp.le.f32.partialorder %v1098_v39, %v1128_v49  ;;  %vm1136_vm13 = vcmp.le.f32.partialorder %v1099_v50, %v1128_v49 }
 0x234   : > { %v1145_v34 = vsel %vm1129_vm4, inf, %v1092_v0  ;;  %v1146_v53 = vsel %vm1130_vm5, inf, %v1093_v37  ;;  %v1147_v15 = vsel %vm1131_vm10, inf, %v1094_v60  ;;  %v1148_v17 = vsel %vm1132_vm11, inf, %v1095_v41 }
 0x235   : > { %v1149_v42 = vsel %vm1133_vm3, inf, %v1096_v14  ;;  %v1150_v55 = vsel %vm1134_vm12, inf, %v1097_v40  ;;  %v1151_v24 = vsel %vm1135_vm2, inf, %v1098_v39  ;;  %v1152_v33 = vsel %vm1136_vm13, inf, %v1099_v50 }
 0x236   : > { %vm1137_vm14 = vcmp.le.f32.partialorder %v1100_v1, %v1128_v49  ;;  %vm1138_vm15 = vcmp.le.f32.partialorder %v1101_v46, %v1128_v49  ;;  %vm1139_vm0 = vcmp.le.f32.partialorder %v1102_v6, %v1128_v49  ;;  %vm1140_vm1 = vcmp.le.f32.partialorder %v1103_v35, %v1128_v49 }
 0x237   : > { %vm1141_vm6 = vcmp.le.f32.partialorder %v1104_v56, %v1128_v49  ;;  %vm1142_vm8 = vcmp.le.f32.partialorder %v1105_v29, %v1128_v49  ;;  %vm1143_vm9 = vcmp.le.f32.partialorder %v1106_v36, %v1128_v49  ;;  %vm1144_vm7 = vcmp.le.f32.partialorder %v1107_v12, %v1128_v49 }
 0x238   : > { %v1161_v54 = vmin.f32 %v1145_v34, %v1149_v42  ;;  %v1162_v51 = vmin.f32 %v1146_v53, %v1150_v55  ;;  %v1163_v38 = vmin.f32 %v1147_v15, %v1151_v24  ;;  %v1164_v9 = vmin.f32 %v1148_v17, %v1152_v33 }
 0x239   : > { %v1153_v0 = vsel %vm1137_vm14, inf, %v1100_v1  ;;  %v1154_v37 = vsel %vm1138_vm15, inf, %v1101_v46  ;;  %v1155_v60 = vsel %vm1139_vm0, inf, %v1102_v6  ;;  %v1156_v41 = vsel %vm1140_vm1, inf, %v1103_v35 }
 0x23a   : > { %v1165_v14 = vmin.f32 %v1161_v54, %v1153_v0  ;;  %v1166_v40 = vmin.f32 %v1162_v51, %v1154_v37  ;;  %v1167_v39 = vmin.f32 %v1163_v38, %v1155_v60  ;;  %v1168_v50 = vmin.f32 %v1164_v9, %v1156_v41  ;;  %v4229_v9 = vld [vmem:[#allocation5_spill] sm:$0xff]  ;;  %v4235_v0 = vld [vmem:[#allocation6_spill] sm:$0xff]  ;;  %v4241_v41 = vld [vmem:[#allocation7_spill] sm:$0xff] }
 0x23b   : > { %v1157_v4 = vsel %vm1141_vm6, inf, %v1104_v56  ;;  %v1158_v5 = vsel %vm1142_vm8, inf, %v1105_v29  ;;  %v1159_v16 = vsel %vm1143_vm9, inf, %v1106_v36  ;;  %v1160_v59 = vsel %vm1144_vm7, inf, %v1107_v12  ;;  %v4238_v37 = vld [vmem:[#allocation9_spill] sm:$0xff] }
 0x23c   : > { %v1169_v48 = vmin.f32 %v1165_v14, %v1157_v4  ;;  %v1170_v58 = vmin.f32 %v1166_v40, %v1158_v5  ;;  %v1171_v47 = vmin.f32 %v1167_v39, %v1159_v16  ;;  %v1172_v25 = vmin.f32 %v1168_v50, %v1160_v59  ;;  %v4244_v14 = vld [vmem:[#allocation11_spill] sm:$0xff]  ;;  %v4247_v39 = vld [vmem:[#allocation8_spill] sm:$0xff]  ;;  %v1514_v16 = vld [vmem:[%s4061_s3 + $0x8] sm:$0xff] }
 0x23d   : > { %vm4098_vm4 = vmmov 1   ;;  %vm4133_vm5 = vcmp.eq.s32.totalorder %v2830_v18, %v2832_v19  ;;  %vm4136_vm11 = vcmp.eq.s32.totalorder %v2846_v22, %v2832_v19  ;;  %vm4139_vm12 = vcmp.eq.s32.totalorder %v2935_v52, %v2832_v19  ;;  %v4250_v50 = vld [vmem:[#allocation12_spill] sm:$0xff]  ;;  %v1515_v5 = vld [vmem:[%s4061_s3 + $0x10] sm:$0xff]  ;;  %v1513_v59 = vld [vmem:[%s4061_s3] sm:$0xff]  ;;  %v1370_v18 = vpop.permute.xlu0 %1369 }
 0x23e   : > { %v1173_v1 = vmin.f32 %v1169_v48, %v1170_v58  ;;  %v1174_v46 = vmin.f32 %v1171_v47, %v1172_v25  ;;  %vm3309_vm10 = vmxor %vm4133_vm5, %vm4098_vm4  ;;  %vm4142_vm13 = vcmp.eq.s32.totalorder %v2948_v57, %v2832_v19  ;;  %vm4145_vm15 = vcmp.eq.s32.totalorder %v2961_v62, %v2832_v19  ;;  %v3670_v48 = vld [vmem:[%s4060_s2] ss:$0 sm:$0xff]  ;;  %v1366_v58 = vpop.permute.xlu1 %1365 }
 0x23f   : > { %vm3317_vm3 = vmxor %vm4136_vm11, %vm4098_vm4  ;;  %vm4148_vm1 = vcmp.eq.s32.totalorder %v2974_v3, %v2832_v19  ;;  %vm4151_vm8 = vcmp.eq.s32.totalorder %v2987_v8, %v2832_v19  ;;  %vm4154_vm7 = vcmp.eq.s32.totalorder %v3000_v13, %v2832_v19  ;;  %vm4157_vm11 = vcmp.eq.s32.totalorder %v2859_v26, %v2832_v19 }
 0x240   : > { %v1175_v6 = vmin.f32 %v1173_v1, %v1174_v46  ;;  %vm3325_vm2 = vmxor %vm4139_vm12, %vm4098_vm4  ;;  %v4161_v8 = vmov 0  ;;  %v4164_v13 = vmov 0  ;;  %v4176_v15 = vmov 0 }
 0x241   : > { %vm3333_vm14 = vmxor %vm4142_vm13, %vm4098_vm4  ;;  %vm4160_vm13 = vcmp.eq.s32.totalorder %v3013_v21, %v2832_v19  ;;  %v2651_v17 = vmov 1.0   ;;  %v4185_v55 = vmov 0  ;;  %v4188_v24 = vmov 0 }
 0x242   : > { %v1176_v29 = vrot.slane %v1175_v6, 4  ;;  %vm3341_vm0 = vmxor %vm4145_vm15, %vm4098_vm4  ;;  %v4191_v33 = vmov 0  ;;  %v4219_v38 = vmov 0  ;;  %v4239_v60 = vmov 0 }
 0x243   : > { %vm3349_vm6 = vmxor %vm4148_vm1, %vm4098_vm4  ;;  %vm4163_vm1 = vcmp.eq.s32.totalorder %v3024_v32, %v2832_v19 }
 0x244   : > { %v1177_v22 = vmin.f32 %v1175_v6, %v1176_v29  ;;  %vm3357_vm9 = vmxor %vm4151_vm8, %vm4098_vm4  ;;  %v1368_v6 = vpop.permute.xlu2 %1367 }
 0x245   : > { %vm3365_vm5 = vmxor %vm4154_vm7, %vm4098_vm4  ;;  %vm4166_vm7 = vcmp.eq.s32.totalorder %v3163_v28, 0  ;;  %v1376_v53 = vpop.permute.xlu0 %1375 }
 0x246   : > { %v1178_v57 = vrot.slane %v1177_v22, 2  ;;  %vm3373_vm12 = vmxor %vm4157_vm11, %vm4098_vm4 }
 0x247   : > { %vm3381_vm15 = vmxor %vm4160_vm13, %vm4098_vm4 }
 0x248   : > { %v1179_v3 = vmin.f32 %v1177_v22, %v1178_v57  ;;  %v4162_v8 = vsel %vm3381_vm15, 4294967295, %v4161_v8  ;;  %vm3389_vm8 = vmxor %vm4163_vm1, %vm4098_vm4  ;;  %vm4170_vm1 = vcmp.eq.s32.totalorder %v3163_v28, 4 }
 0x249   : > { %v4165_v13 = vsel %vm3389_vm8, 4294967295, %v4164_v13  ;;  %vm1198_vm11 = vmand %vm4166_vm7, %vm3309_vm10 }
 0x24a   : > { %v1180_v26 = vrot.slane %v1179_v3, 1  ;;  %vm4167_vm13 = vmmov %vm4166_vm7 }
 0x24b   : > { %vm3401_vm15 = vmand %vm4167_vm13, %vm3317_vm3 }
 0x24c   : > { %v1181_v34 = vmin.f32 %v1179_v3, %v1180_v26  ;;  %vm3409_vm4 = vmand %vm4170_vm1, %vm3325_vm2  ;;  %vm4178_vm2 = vcmp.eq.s32.totalorder %v3163_v28, 5  ;;  %v1372_v10 = vpop.permute.xlu2 %1371 }
 0x24d   : > { %vm4173_vm10 = vmmov %vm4170_vm1 }
 0x24e   : > { %vm1214_vm8 = vcmp.le.f32.partialorder %v3175_v31, %v1181_v34  ;;  %vm3418_vm7 = vmand %vm4173_vm10, %vm3333_vm14 }
 0x24f   : > { %vm3422_vm3 = vmand %vm1198_vm11, %vm1214_vm8  ;;  %vm4184_vm11 = vcmp.eq.s32.totalorder %v3163_v28, 6 }
 0x250   : > { %v4177_v15 = vsel %vm3422_vm3, 4294967295, %v4176_v15  ;;  %2400 = vmatmul.msk.f32.vlgmr.msra.gmra.mxu2 %vm3422_vm3, %v2651_v17  ;;  %vm3433_vm13 = vmand %vm4178_vm2, %vm3341_vm0  ;;  %vm1215_vm0 = vcmp.le.f32.partialorder %v3166_v61, %v1181_v34  ;;  %vm4194_vm3 = vcmp.eq.s32.totalorder %v3163_v28, 7 }
 0x251   : > { %vm4181_vm14 = vmmov %vm4178_vm2 }
 0x252   : > { %vm3441_vm8 = vmand %vm4181_vm14, %vm3349_vm6  ;;  %vm4190_vm6 = vcmp.eq.s32.totalorder %v3163_v28, 1 }
 0x253   : > { %vm3449_vm1 = vmand %vm4184_vm11, %vm3357_vm9  ;;  %vm1222_vm9 = vcmp.le.f32.partialorder %v3218_v45, %v1181_v34  ;;  %v4201_v45 = vmov 0 }
 0x254   : > { %v4186_v55 = vsel %vm3449_vm1, 4294967295, %v4185_v55  ;;  %vm4187_vm10 = vmmov %vm4184_vm11  ;;  %vm4193_vm11 = vnez %v4162_v8 }
 0x255   : > { %vm3458_vm2 = vmand %vm4187_vm10, %vm3365_vm5  ;;  %vm1223_vm5 = vcmp.le.f32.partialorder %v3209_v7, %v1181_v34  ;;  %vm4197_vm10 = vnez %v4165_v13  ;;  %v1374_v13 = vpop.permute.xlu1 %1373 }
 0x256   : > { %v4189_v24 = vsel %vm3458_vm2, 4294967295, %v4188_v24  ;;  %vm3466_vm14 = vmand %vm4190_vm6, %vm3373_vm12 }
 0x257   : > { %v4192_v33 = vsel %vm3466_vm14, 4294967295, %v4191_v33  ;;  %vm3475_vm1 = vmand %vm4194_vm3, %vm4193_vm11  ;;  %vm1225_vm14 = vcmp.le.f32.partialorder %v3231_v44, %v1181_v34 }
 0x258   : > { %vm4198_vm2 = vmmov %vm4194_vm3  ;;  %vm1224_vm3 = vcmp.le.f32.partialorder %v3229_v11, %v1181_v34  ;;  %v4207_v11 = vmov 0 }
 0x259   : > { %vm3484_vm12 = vmand %vm4198_vm2, %vm4197_vm10  ;;  %vm1227_vm2 = vcmp.le.f32.partialorder %v3233_v63, %v1181_v34  ;;  %v4215_v63 = vmov 0 }
 0x25a   : > { %vm3490_vm6 = vmand %vm3401_vm15, %vm1215_vm0  ;;  %vm1226_vm0 = vcmp.le.f32.partialorder %v3250_v2, %v1181_v34 }
 0x25b   : > { %v4202_v45 = vsel %vm3490_vm6, 4294967295, %v4201_v45  ;;  %vm3497_vm11 = vmand %vm3409_vm4, %vm1222_vm9  ;;  %2401 = vmatmul.msk.f32.gmra.mxu2 %vm3490_vm6, %v2651_v17  ;;  %vm4214_vm6 = vnez %v4189_v24 }
 0x25c   : > { %vm3507_vm15 = vmand %vm3418_vm7, %vm1223_vm5  ;;  %vm1228_vm7 = vcmp.le.f32.partialorder %v3252_v43, %v1181_v34  ;;  %vm4211_vm5 = vnez %v4186_v55  ;;  %v4217_v43 = vmov 0 }
 0x25d   : > { %vm3514_vm4 = vmand %vm3433_vm13, %vm1224_vm3  ;;  %vm1229_vm13 = vcmp.le.f32.partialorder %v3278_v27, %v1181_v34  ;;  %vm1216_vm3 = vcmp.le.f32.partialorder %v3168_v23, %v1181_v34  ;;  %v4222_v23 = vmov 0  ;;  %v4227_v27 = vmov 0 }
 0x25e   : > { %v4208_v11 = vsel %vm3514_vm4, 4294967295, %v4207_v11  ;;  %vm3521_vm9 = vmand %vm3441_vm8, %vm1225_vm14 }
 0x25f   : > { %vm3528_vm10 = vmand %vm4211_vm5, %vm1226_vm0  ;;  %vm4221_vm0 = vnez %v4192_v33  ;;  %v1378_v33 = vpop.permute.xlu2 %1377 }
 0x260   : > { %vm3536_vm4 = vmand %vm4214_vm6, %vm1227_vm2  ;;  %vm4225_vm6 = vcmp.eq.s32.totalorder %v2872_v30, %v2832_v19  ;;  %v4232_v30 = vld [vmem:[#allocation10_spill] sm:$0xff] }
 0x261   : > { %v4216_v63 = vsel %vm3536_vm4, 4294967295, %v4215_v63  ;;  %vm3542_vm8 = vmand %vm3475_vm1, %vm1228_vm7  ;;  %vm4224_vm1 = vmmov 1  }
 0x262   : > { %v4218_v43 = vsel %vm3542_vm8, 4294967295, %v4217_v43  ;;  %vm3548_vm14 = vmand %vm3484_vm12, %vm1229_vm13  ;;  %vm4226_vm12 = vcmp.eq.s32.totalorder %v3163_v28, 1  ;;  %vm1217_vm13 = vcmp.le.f32.partialorder %v3173_v20, %v1181_v34  ;;  %v4233_v20 = vmov 0 }
 0x263   : > { %v4220_v38 = vsel %vm3548_vm14, 4294967295, %v4219_v38  ;;  %vm3554_vm5 = vmand %vm4221_vm0, %vm1216_vm3  ;;  %vm4230_vm3 = vcmp.eq.s32.totalorder %v4229_v9, %v2832_v19 }
 0x264   : > { %v4223_v23 = vsel %vm3554_vm5, 4294967295, %v4222_v23  ;;  %2402 = vmatmul.msk.f32.gmra.mxu2 %vm3554_vm5, %v2651_v17  ;;  %vm1185_vm2 = vmxor %vm4225_vm6, %vm4224_vm1  ;;  %vm4231_vm6 = vcmp.eq.s32.totalorder %v3163_v28, 2 }
 0x265   : > { %vm1201_vm7 = vmand %vm4226_vm12, %vm1185_vm2  ;;  %vm1218_vm2 = vcmp.le.f32.partialorder %v4232_v30, %v1181_v34 }
 0x266   : > { %vm3568_vm14 = vmand %vm1201_vm7, %vm1217_vm13  ;;  %vm4236_vm7 = vcmp.eq.s32.totalorder %v4235_v0, %v2832_v19  ;;  %v1380_v0 = vpop.permute.xlu1 %1379 }
 0x267   : > { %v4228_v27 = vsel %vm3568_vm14, 4294967295, %v4227_v27  ;;  %vm1186_vm0 = vmxor %vm4230_vm3, %vm4224_vm1 }
 0x268   : > { %vm1202_vm5 = vmand %vm4231_vm6, %vm1186_vm0  ;;  %vm1219_vm0 = vcmp.le.f32.partialorder %v4238_v37, %v1181_v34 }
 0x269   : > { %vm3582_vm12 = vmand %vm1202_vm5, %vm1218_vm2  ;;  %vm4242_vm5 = vcmp.eq.s32.totalorder %v4241_v41, %v2832_v19 }
 0x26a   : > { %v4234_v20 = vsel %vm3582_vm12, 4294967295, %v4233_v20  ;;  %vm1187_vm13 = vmxor %vm4236_vm7, %vm4224_vm1  ;;  %vm4243_vm7 = vcmp.eq.s32.totalorder %v3163_v28, 3 }
 0x26b   : > { %vm4237_vm3 = vmmov %vm4231_vm6 }
 0x26c   : > { %2403 = vmatmul.msk.f32.gmra.mxu2 %vm3568_vm14, %v2651_v17  ;;  %vm1203_vm14 = vmand %vm4237_vm3, %vm1187_vm13  ;;  %vm1220_vm13 = vcmp.le.f32.partialorder %v4244_v14, %v1181_v34 }
 0x26d   : > { %vm3596_vm6 = vmand %vm1203_vm14, %vm1219_vm0  ;;  %vm4248_vm14 = vcmp.eq.s32.totalorder %v4247_v39, %v2832_v19  ;;  %v1516_v19 = vld [vmem:[%s4061_s3 + $0x18] sm:$0xff] }
 0x26e   : > { %v4240_v60 = vsel %vm3596_vm6, 4294967295, %v4239_v60  ;;  %vm1188_vm2 = vmxor %vm4242_vm5, %vm4224_vm1  ;;  %1579 = vmatpush.msrb.mxu3 %v1516_v19 }
 0x26f   : > { %vm1189_vm0 = vmxor %vm4248_vm14, %vm4224_vm1  ;;  %vm4253_vm1 = vnez %v4208_v11  ;;  %vm4256_vm14 = vnez %v4202_v45 }
 0x270   : > { %vm4249_vm5 = vmmov %vm4243_vm7  ;;  %1580 = vmatpush.msrb.mxu3 %v1515_v5 }
 0x272   : > { %1581 = vmatpush.msrb.mxu3 %v1514_v16 }
 0x274   : > { %2404 = vmatmul.msk.f32.gmra.mxu2 %vm3582_vm12, %v2651_v17  ;;  %vm1204_vm12 = vmand %vm4243_vm7, %vm1188_vm2  ;;  %vm1221_vm2 = vcmp.le.f32.partialorder %v4250_v50, %v1181_v34  ;;  %1582 = vmatpush.msrb.mxu3 %v1513_v59  ;;  %v1382_v50 = vpop.permute.xlu0 %1381 }
 0x275   : > { %vm3610_vm3 = vmand %vm1204_vm12, %vm1220_vm13  ;;  %vm4254_vm12 = vnez %v4220_v38  ;;  %vm4255_vm13 = vnez %v4177_v15 }
 0x27c   : > { %2405 = vmatmul.msk.f32.gmra.mxu2 %vm3596_vm6, %v2651_v17  ;;  %vm1205_vm6 = vmand %vm4249_vm5, %vm1189_vm0  ;;  %vm4257_vm0 = vnez %v4223_v23  ;;  %vm4258_vm5 = vnez %v4228_v27 }
 0x27d   : > { %vm3624_vm7 = vmand %vm1205_vm6, %vm1221_vm2  ;;  %vm4114_vm6 = vcmask 261120   ;;  %vm4259_vm2 = vnez %v4234_v20 }
 0x284   : > { %2406 = vmatmul.msk.f32.gmra.mxu2 %vm3610_vm3, %v2651_v17 }
 0x28c   : > { %2407 = vmatmul.msk.f32.gmra.mxu2 %vm3624_vm7, %v2651_v17 }
 0x294   : > { %2408 = vmatmul.msk.f32.gmra.mxu2 %vm3497_vm11, %v2651_v17 }
 0x29c   : > { %2409 = vmatmul.msk.f32.gmra.mxu2 %vm3507_vm15, %v2651_v17 }
 0x2a4   : > { %2410 = vmatmul.msk.f32.gmra.mxu2 %vm4253_vm1, %v2651_v17 }
 0x2ac   : > { %2411 = vmatmul.msk.f32.gmra.mxu2 %vm3521_vm9, %v2651_v17 }
 0x2b4   : > { %2412 = vmatmul.msk.f32.gmra.mxu2 %vm3528_vm10, %v2651_v17 }
 0x2bc   : > { %2413 = vmatmul.msk.f32.gmra.mxu2 %vm3536_vm4, %v2651_v17 }
 0x2c4   : > { %2414 = vmatmul.msk.f32.gmra.mxu2 %vm3542_vm8, %v2651_v17 }
 0x2cc   : > { %2415 = vmatmul.msk.f32.gmra.mxu2 %vm4254_vm12, %v2651_v17 }
 0x2d3   : > { %v1430_v47 = vpop.f32.mrf.mxu2 }
 0x2d4   : > { %v1431_v25 = vadd.f32 %v1430_v47, %v1366_v58  ;;  %v1384_v58 = vpop.permute.xlu2 %1383 }
 0x2d6   : > { %v1481_v1 = vadd.f32 %v3670_v48, %v1431_v25 }
 0x2d8   : > { %v1497_v46 = vmax.f32 %v1481_v1, 0.0 }
 0x2da   : > { %2416 = vmatmul.msk.f32.vlgmr.msrb.gmra.mxu3 %vm4114_vm6, %v1497_v46 }
 0x2de   : > { %v1433_v35 = vpop.f32.mrf.mxu2 }
 0x2df   : > { %v1434_v56 = vadd.f32 %v1433_v35, %v1368_v6  ;;  %v1386_v6 = vpop.permute.xlu1 %1385 }
 0x2e1   : > { %v1482_v29 = vadd.f32 %v3670_v48, %v1434_v56 }
 0x2e3   : > { %v1498_v36 = vmax.f32 %v1482_v29, 0.0 }
 0x2e5   : > { %2417 = vmatmul.msk.f32.gmra.mxu3 %vm4114_vm6, %v1498_v36 }
 0x2e7   : > { %v1436_v22 = vpop.f32.mrf.mxu2 }
 0x2e8   : > { %v1437_v12 = vadd.f32 %v1436_v22, %v1370_v18  ;;  %v1388_v18 = vpop.permute.xlu0 %1387 }
 0x2ea   : > { %v1483_v52 = vadd.f32 %v3670_v48, %v1437_v12 }
 0x2ec   : > { %v1499_v57 = vmax.f32 %v1483_v52, 0.0 }
 0x2ee   : > { %2418 = vmatmul.msk.f32.gmra.mxu3 %vm4114_vm6, %v1499_v57 }
 0x2ef   : > { %v1439_v62 = vpop.f32.mrf.mxu2 }
 0x2f0   : > { %v1440_v3 = vadd.f32 %v1439_v62, %v1372_v10  ;;  %v1390_v10 = vpop.permute.xlu2 %1389 }
 0x2f2   : > { %v1484_v49 = vadd.f32 %v3670_v48, %v1440_v3 }
 0x2f4   : > { %v1500_v8 = vmax.f32 %v1484_v49, 0.0 }
 0x2f6   : > { %2419 = vmatmul.msk.f32.gmra.mxu3 %vm4114_vm6, %v1500_v8 }
 0x2f7   : > { %v1442_v26 = vpop.f32.mrf.mxu2 }
 0x2f8   : > { %v1443_v34 = vadd.f32 %v1442_v26, %v1374_v13  ;;  %v1392_v13 = vpop.permute.xlu1 %1391 }
 0x2fa   : > { %v1485_v21 = vadd.f32 %v3670_v48, %v1443_v34 }
 0x2fc   : > { %v1501_v32 = vmax.f32 %v1485_v21, 0.0 }
 0x2fe   : > { %2420 = vmatmul.msk.f32.gmra.mxu3 %vm4114_vm6, %v1501_v32 }
 0x2ff   : > { %v1445_v31 = vpop.f32.mrf.mxu2 }
 0x300   : > { %v1446_v42 = vadd.f32 %v1445_v31, %v1376_v53  ;;  %v1394_v53 = vpop.permute.xlu0 %1393 }
 0x302   : > { %v1486_v55 = vadd.f32 %v3670_v48, %v1446_v42 }
 0x304   : > { %v1502_v24 = vmax.f32 %v1486_v55, 0.0 }
 0x306   : > { %2421 = vmatmul.msk.f32.gmra.mxu3 %vm4114_vm6, %v1502_v24 }
 0x307   : > { %v1448_v61 = vpop.f32.mrf.mxu2 }
 0x308   : > { %v1449_v54 = vadd.f32 %v1448_v61, %v1378_v33  ;;  %v1396_v33 = vpop.permute.xlu2 %1395 }
 0x30a   : > { %v1487_v9 = vadd.f32 %v3670_v48, %v1449_v54 }
 0x30c   : > { %v1503_v30 = vmax.f32 %v1487_v9, 0.0 }
 0x30e   : > { %2422 = vmatmul.msk.f32.gmra.mxu3 %vm4114_vm6, %v1503_v30 }
 0x30f   : > { %v1451_v37 = vpop.f32.mrf.mxu2 }
 0x310   : > { %v1452_v41 = vadd.f32 %v1451_v37, %v1380_v0 }
 0x312   : > { %v1488_v14 = vadd.f32 %v3670_v48, %v1452_v41 }
 0x314   : > { %v1504_v39 = vmax.f32 %v1488_v14, 0.0 }
 0x316   : > { %2423 = vmatmul.msk.f32.gmra.mxu3 %vm4114_vm6, %v1504_v39 }
 0x317   : > { %v1454_v19 = vpop.f32.mrf.mxu2 }
 0x318   : > { %v1455_v5 = vadd.f32 %v1454_v19, %v1382_v50 }
 0x31a   : > { %v1489_v16 = vadd.f32 %v3670_v48, %v1455_v5 }
 0x31c   : > { %v1505_v59 = vmax.f32 %v1489_v16, 0.0 }
 0x31e   : > { %2424 = vmatmul.msk.f32.gmra.mxu3 %vm4114_vm6, %v1505_v59 }
 0x31f   : > { %v1457_v47 = vpop.f32.mrf.mxu2 }
 0x320   : > { %v1458_v25 = vadd.f32 %v1457_v47, %v1384_v58 }
 0x322   : > { %v1490_v1 = vadd.f32 %v3670_v48, %v1458_v25 }
 0x324   : > { %v1506_v46 = vmax.f32 %v1490_v1, 0.0 }
 0x326   : > { %2425 = vmatmul.msk.f32.gmra.mxu3 %vm4114_vm6, %v1506_v46 }
 0x327   : > { %v1460_v35 = vpop.f32.mrf.mxu2 }
 0x328   : > { %v1461_v56 = vadd.f32 %v1460_v35, %v1386_v6  ;;  %v1799_v6 = vld [vmem:[%s4063_s5 + $0x18] sm:$0xff]  ;;  %v1798_v35 = vld [vmem:[%s4063_s5 + $0x10] sm:$0xff] }
 0x329   : > { %1861 = vmatpush.msra.mxu3 %v1799_v6 }
 0x32a   : > { %v1491_v29 = vadd.f32 %v3670_v48, %v1461_v56  ;;  %v1797_v56 = vld [vmem:[%s4063_s5 + $0x8] sm:$0xff] }
 0x32b   : > { %1862 = vmatpush.msra.mxu3 %v1798_v35 }
 0x32c   : > { %v1507_v36 = vmax.f32 %v1491_v29, 0.0  ;;  %v1796_v29 = vld [vmem:[%s4063_s5] sm:$0xff] }
 0x32d   : > { %1863 = vmatpush.msra.mxu3 %v1797_v56 }
 0x32e   : > { %2426 = vmatmul.msk.f32.gmra.mxu3 %vm4114_vm6, %v1507_v36  ;;  %v3783_v36 = vld [vmem:[%s4062_s4] ss:$0 sm:$0xff] }
 0x32f   : > { %v1463_v22 = vpop.f32.mrf.mxu2  ;;  %1864 = vmatpush.msra.mxu3 %v1796_v29 }
 0x330   : > { %v1464_v12 = vadd.f32 %v1463_v22, %v1388_v18 }
 0x332   : > { %v1492_v52 = vadd.f32 %v3670_v48, %v1464_v12 }
 0x334   : > { %v1508_v57 = vmax.f32 %v1492_v52, 0.0 }
 0x336   : > { %2427 = vmatmul.msk.f32.gmra.mxu3 %vm4114_vm6, %v1508_v57 }
 0x337   : > { %v1466_v62 = vpop.f32.mrf.mxu2 }
 0x338   : > { %v1467_v3 = vadd.f32 %v1466_v62, %v1390_v10 }
 0x33a   : > { %v1493_v49 = vadd.f32 %v3670_v48, %v1467_v3 }
 0x33c   : > { %v1509_v8 = vmax.f32 %v1493_v49, 0.0 }
 0x33e   : > { %2428 = vmatmul.msk.f32.gmra.mxu3 %vm4114_vm6, %v1509_v8 }
 0x33f   : > { %v1469_v26 = vpop.f32.mrf.mxu2 }
 0x340   : > { %v1470_v34 = vadd.f32 %v1469_v26, %v1392_v13 }
 0x342   : > { %v1494_v21 = vadd.f32 %v3670_v48, %v1470_v34 }
 0x344   : > { %v1510_v32 = vmax.f32 %v1494_v21, 0.0 }
 0x346   : > { %2429 = vmatmul.msk.f32.gmra.mxu3 %vm4114_vm6, %v1510_v32 }
 0x347   : > { %v1472_v31 = vpop.f32.mrf.mxu2 }
 0x348   : > { %v1473_v42 = vadd.f32 %v1472_v31, %v1394_v53 }
 0x34a   : > { %v1495_v55 = vadd.f32 %v3670_v48, %v1473_v42 }
 0x34c   : > { %v1511_v24 = vmax.f32 %v1495_v55, 0.0 }
 0x34e   : > { %2430 = vmatmul.msk.f32.gmra.mxu3 %vm4114_vm6, %v1511_v24 }
 0x34f   : > { %v1475_v61 = vpop.f32.mrf.mxu2 }
 0x350   : > { %v1476_v54 = vadd.f32 %v1475_v61, %v1396_v33 }
 0x352   : > { %v1496_v9 = vadd.f32 %v3670_v48, %v1476_v54 }
 0x354   : > { %v1512_v30 = vmax.f32 %v1496_v9, 0.0 }
 0x356   : > { %2431 = vmatmul.msk.f32.gmra.mxu3 %vm4114_vm6, %v1512_v30  ;;  %vm4260_vm6 = vnez %v4240_v60 }
 0x35d   : > { %v1584_v0 = vpop.f32.mrf.mxu3 }
 0x35e   : > { %1648 = vrot.lane.b32.xlu1 %v1584_v0, %s2648_s21 }
 0x368   : > { %v1587_v37 = vpop.f32.mrf.mxu3 }
 0x369   : > { %1650 = vrot.lane.b32.xlu0 %v1587_v37, %s2648_s21 }
 0x371   : > { %v1590_v41 = vpop.f32.mrf.mxu3 }
 0x372   : > { %1652 = vrot.lane.b32.xlu2 %v1590_v41, %s2648_s21 }
 0x379   : > { %v1593_v14 = vpop.f32.mrf.mxu3 }
 0x37a   : > { %1654 = vrot.lane.b32.xlu1 %v1593_v14, %s2648_s21 }
 0x381   : > { %v1596_v39 = vpop.f32.mrf.mxu3 }
 0x382   : > { %1656 = vrot.lane.b32.xlu0 %v1596_v39, %s2648_s21 }
 0x389   : > { %v1599_v50 = vpop.f32.mrf.mxu3 }
 0x38a   : > { %1658 = vrot.lane.b32.xlu2 %v1599_v50, %s2648_s21 }
 0x391   : > { %v1602_v48 = vpop.f32.mrf.mxu3 }
 0x392   : > { %1660 = vrot.lane.b32.xlu1 %v1602_v48, %s2648_s21 }
 0x399   : > { %v1605_v19 = vpop.f32.mrf.mxu3 }
 0x39a   : > { %1662 = vrot.lane.b32.xlu0 %v1605_v19, %s2648_s21 }
 0x3a1   : > { %v1608_v5 = vpop.f32.mrf.mxu3 }
 0x3a2   : > { %1664 = vrot.lane.b32.xlu2 %v1608_v5, %s2648_s21 }
 0x3a9   : > { %v1611_v16 = vpop.f32.mrf.mxu3 }
 0x3aa   : > { %1666 = vrot.lane.b32.xlu1 %v1611_v16, %s2648_s21 }
 0x3b1   : > { %v1614_v59 = vpop.f32.mrf.mxu3 }
 0x3b2   : > { %1668 = vrot.lane.b32.xlu0 %v1614_v59, %s2648_s21 }
 0x3b9   : > { %v1617_v58 = vpop.f32.mrf.mxu3 }
 0x3ba   : > { %1670 = vrot.lane.b32.xlu2 %v1617_v58, %s2648_s21 }
 0x3c1   : > { %v1620_v47 = vpop.f32.mrf.mxu3 }
 0x3c2   : > { %1672 = vrot.lane.b32.xlu1 %v1620_v47, %s2648_s21 }
 0x3c9   : > { %v1623_v25 = vpop.f32.mrf.mxu3 }
 0x3ca   : > { %1674 = vrot.lane.b32.xlu0 %v1623_v25, %s2648_s21 }
 0x3cc   : > { %v1653_v13 = vpop.permute.xlu2 %1652 }
 0x3d0   : > { %v1649_v18 = vpop.permute.xlu1 %1648 }
 0x3d1   : > { %v1626_v1 = vpop.f32.mrf.mxu3 }
 0x3d2   : > { %1676 = vrot.lane.b32.xlu2 %v1626_v1, %s2648_s21 }
 0x3d9   : > { %v1629_v46 = vpop.f32.mrf.mxu3 }
 0x3da   : > { %1678 = vrot.lane.b32.xlu1 %v1629_v46, %s2648_s21  ;;  %1696 = vmatpush.msrb.mxu1 %v1629_v46  ;;  %s2246_s21 = scalar_lea.hbm %s4065_s7, %s2740_s13  ;;  %s2235_s13 = scalar_lea.sflag [#allocation3], %s270_s17 }
 0x3db   : > { %v1651_v10 = vpop.permute.xlu0 %1650  ;;  %s2249_s28 = sshll.u32 %s2246_s21, 4  ;;  %s2250_s28 = int_to_ptr.hbm [resolvable:$true] %s2249_s28 }
 0x3dc   : > { %1697 = vmatpush.msrb.mxu1 %v1626_v1  ;;  %s2598_s29 = sshra.s32 %s2250_s28, 4  ;;  %s2599_s29 = int_to_ptr.hbm [resolvable:$true] %s2598_s29 }
 0x3dd   : > { %s2600_s8 = scalar_lea.hbm %s2599_s29, 16  ;;  %p2605_p0 = scmp.lt.s32.totalorder %s2599_s29, %s4065_s7 }
 0x3de   : > { %1698 = vmatpush.msrb.mxu1 %v1623_v25  ;;  %p2601_p11 = scmp.ne.s32.totalorder %s2599_s29, %s2600_s8  ;;  %p2606_p1 = scmp.lt.s32.totalorder %s2604_s15, %s2600_s8 }
 0x3e0   : > { %1699 = vmatpush.msrb.mxu1 %v1620_v47  ;;  %p2602_p12 = pnand %p2601_p11, %p2730_p5  ;;  %p2607_p2 = por %p2606_p1, %p2605_p0 }
 0x3e2   : > { %1700 = vmatpush.msrb.mxu1 %v1617_v58  ;;  %p2603_p13 = pneg %p2602_p12 }
 0x3e4   : > { %1701 = vmatpush.msrb.mxu1 %v1614_v59  ;;  %p2608_p3 = pnand %p2607_p2, %p2603_p13 }
 0x3e6   : > { %1702 = vmatpush.msrb.mxu1 %v1611_v16 }
 0x3e8   : > { %1703 = vmatpush.msrb.mxu1 %v1608_v5 }
 0x3ea   : > { %1704 = vmatpush.msrb.mxu1 %v1605_v19 }
 0x3ec   : > { %1705 = vmatpush.msrb.mxu1 %v1602_v48  ;;  %v1655_v53 = vpop.permute.xlu1 %1654 }
 0x3ee   : > { %1706 = vmatpush.msrb.mxu1 %v1599_v50 }
 0x3f0   : > { %1707 = vmatpush.msrb.mxu1 %v1596_v39 }
 0x3f2   : > { %1708 = vmatpush.msrb.mxu1 %v1593_v14 }
 0x3f4   : > { %1709 = vmatpush.msrb.mxu1 %v1590_v41  ;;  %v1657_v33 = vpop.permute.xlu0 %1656 }
 0x3f6   : > { %1710 = vmatpush.msrb.mxu1 %v1587_v37 }
 0x3f8   : > { %1711 = vmatpush.msrb.mxu1 %v1584_v0  ;;  %v1659_v0 = vpop.permute.xlu2 %1658 }
 0x3f9   : > { %2432 = vmatmul.msk.f32.vlgmr.msrb.gmra.mxu1 %vm4255_vm13, %v2651_v17 }
 0x400   : > { %v1665_v46 = vpop.permute.xlu2 %1664 }
 0x401   : > { %2433 = vmatmul.msk.f32.gmra.mxu1 %vm4256_vm14, %v2651_v17 }
 0x404   : > { %v1661_v50 = vpop.permute.xlu1 %1660 }
 0x409   : > { %2434 = vmatmul.msk.f32.gmra.mxu1 %vm4257_vm0, %v2651_v17 }
 0x40c   : > { %v1663_v59 = vpop.permute.xlu0 %1662 }
 0x411   : > { %2435 = vmatmul.msk.f32.gmra.mxu1 %vm4258_vm5, %v2651_v17 }
 0x419   : > { %2436 = vmatmul.msk.f32.gmra.mxu1 %vm4259_vm2, %v2651_v17 }
 0x421   : > { %2437 = vmatmul.msk.f32.gmra.mxu1 %vm4260_vm6, %v2651_v17 }
 0x429   : > { %2438 = vmatmul.msk.f32.gmra.mxu1 %vm3610_vm3, %v2651_v17 }
 0x431   : > { %2439 = vmatmul.msk.f32.gmra.mxu1 %vm3624_vm7, %v2651_v17 }
 0x439   : > { %2440 = vmatmul.msk.f32.gmra.mxu1 %vm3497_vm11, %v2651_v17 }
 0x441   : > { %2441 = vmatmul.msk.f32.gmra.mxu1 %vm3507_vm15, %v2651_v17 }
 0x449   : > { %2442 = vmatmul.msk.f32.gmra.mxu1 %vm4253_vm1, %v2651_v17 }
 0x451   : > { %2443 = vmatmul.msk.f32.gmra.mxu1 %vm3521_vm9, %v2651_v17 }
 0x459   : > { %2444 = vmatmul.msk.f32.gmra.mxu1 %vm3528_vm10, %v2651_v17 }
 0x461   : > { %2445 = vmatmul.msk.f32.gmra.mxu1 %vm3536_vm4, %v2651_v17  ;;  %vm4261_vm4 = vcmask 261120  }
 0x469   : > { %2446 = vmatmul.msk.f32.gmra.mxu1 %vm3542_vm8, %v2651_v17  ;;  %vm4263_vm8 = vmmov %vm4261_vm4 }
 0x471   : > { %2447 = vmatmul.msk.f32.gmra.mxu1 %vm4254_vm12, %v2651_v17  ;;  %vm4262_vm12 = vmmov %vm4261_vm4 }
 0x476   : > { %v1713_v22 = vpop.f32.mrf.mxu1 }
 0x477   : > { %v1714_v12 = vadd.f32 %v1713_v22, %v1649_v18  ;;  %v1667_v18 = vpop.permute.xlu1 %1666 }
 0x479   : > { %v1764_v52 = vadd.f32 %v3783_v36, %v1714_v12 }
 0x47b   : > { %v1780_v57 = vmax.f32 %v1764_v52, 0.0 }
 0x47d   : > { %2448 = vmatmul.msk.f32.vlgmr.msra.gmra.mxu3 %vm4261_vm4, %v1780_v57 }
 0x47e   : > { %v1716_v62 = vpop.f32.mrf.mxu1 }
 0x47f   : > { %v1717_v3 = vadd.f32 %v1716_v62, %v1651_v10  ;;  %v1669_v10 = vpop.permute.xlu0 %1668 }
 0x481   : > { %v1765_v49 = vadd.f32 %v3783_v36, %v1717_v3 }
 0x483   : > { %v1781_v8 = vmax.f32 %v1765_v49, 0.0 }
 0x485   : > { %2449 = vmatmul.msk.f32.gmra.mxu3 %vm4262_vm12, %v1781_v8  ;;  %vm4264_vm12 = vmmov %vm4261_vm4 }
 0x486   : > { %v1719_v26 = vpop.f32.mrf.mxu1 }
 0x487   : > { %v1720_v34 = vadd.f32 %v1719_v26, %v1653_v13  ;;  %v1671_v13 = vpop.permute.xlu2 %1670 }
 0x489   : > { %v1766_v21 = vadd.f32 %v3783_v36, %v1720_v34 }
 0x48b   : > { %v1782_v32 = vmax.f32 %v1766_v21, 0.0 }
 0x48d   : > { %2450 = vmatmul.msk.f32.gmra.mxu3 %vm4263_vm8, %v1782_v32  ;;  %vm4265_vm8 = vmmov %vm4261_vm4 }
 0x48e   : > { %v1722_v31 = vpop.f32.mrf.mxu1 }
 0x48f   : > { %v1723_v42 = vadd.f32 %v1722_v31, %v1655_v53  ;;  %v1673_v53 = vpop.permute.xlu1 %1672 }
 0x491   : > { %v1767_v55 = vadd.f32 %v3783_v36, %v1723_v42 }
 0x493   : > { %v1783_v24 = vmax.f32 %v1767_v55, 0.0 }
 0x495   : > { %2451 = vmatmul.msk.f32.gmra.mxu3 %vm4261_vm4, %v1783_v24 }
 0x496   : > { %v1725_v61 = vpop.f32.mrf.mxu1 }
 0x497   : > { %v1726_v54 = vadd.f32 %v1725_v61, %v1657_v33  ;;  %v1675_v33 = vpop.permute.xlu0 %1674 }
 0x499   : > { %v1768_v9 = vadd.f32 %v3783_v36, %v1726_v54 }
 0x49b   : > { %v1784_v30 = vmax.f32 %v1768_v9, 0.0 }
 0x49d   : > { %2452 = vmatmul.msk.f32.gmra.mxu3 %vm4264_vm12, %v1784_v30  ;;  %vm4266_vm12 = vmmov %vm4261_vm4 }
 0x49e   : > { %v1728_v37 = vpop.f32.mrf.mxu1 }
 0x49f   : > { %v1729_v41 = vadd.f32 %v1728_v37, %v1659_v0  ;;  %v1677_v0 = vpop.permute.xlu2 %1676 }
 0x4a1   : > { %v1769_v14 = vadd.f32 %v3783_v36, %v1729_v41 }
 0x4a3   : > { %v1785_v39 = vmax.f32 %v1769_v14, 0.0 }
 0x4a5   : > { %2453 = vmatmul.msk.f32.gmra.mxu3 %vm4265_vm8, %v1785_v39  ;;  %vm4267_vm8 = vmmov %vm4261_vm4 }
 0x4a6   : > { %v1731_v48 = vpop.f32.mrf.mxu1 }
 0x4a7   : > { %v1732_v19 = vadd.f32 %v1731_v48, %v1661_v50  ;;  %v1679_v50 = vpop.permute.xlu1 %1678 }
 0x4a9   : > { %v1770_v5 = vadd.f32 %v3783_v36, %v1732_v19 }
 0x4ab   : > { %v1786_v16 = vmax.f32 %v1770_v5, 0.0 }
 0x4ad   : > { %2454 = vmatmul.msk.f32.gmra.mxu3 %vm4261_vm4, %v1786_v16 }
 0x4ae   : > { %v1734_v58 = vpop.f32.mrf.mxu1 }
 0x4af   : > { %v1735_v47 = vadd.f32 %v1734_v58, %v1663_v59 }
 0x4b1   : > { %v1771_v25 = vadd.f32 %v3783_v36, %v1735_v47 }
 0x4b3   : > { %v1787_v1 = vmax.f32 %v1771_v25, 0.0 }
 0x4b5   : > { %2455 = vmatmul.msk.f32.gmra.mxu3 %vm4266_vm12, %v1787_v1  ;;  %vm4268_vm12 = vmmov %vm4261_vm4 }
 0x4b6   : > { %v1737_v6 = vpop.f32.mrf.mxu1 }
 0x4b7   : > { %v1738_v35 = vadd.f32 %v1737_v6, %v1665_v46 }
 0x4b9   : > { %v1772_v56 = vadd.f32 %v3783_v36, %v1738_v35 }
 0x4bb   : > { %v1788_v29 = vmax.f32 %v1772_v56, 0.0 }
 0x4bd   : > { %2456 = vmatmul.msk.f32.gmra.mxu3 %vm4267_vm8, %v1788_v29  ;;  %vm4269_vm8 = vmmov %vm4261_vm4 }
 0x4be   : > { %v1740_v22 = vpop.f32.mrf.mxu1 }
 0x4bf   : > { %v1741_v12 = vadd.f32 %v1740_v22, %v1667_v18 }
 0x4c1   : > { %v1773_v52 = vadd.f32 %v3783_v36, %v1741_v12 }
 0x4c3   : > { %v1789_v57 = vmax.f32 %v1773_v52, 0.0 }
 0x4c5   : > { %2457 = vmatmul.msk.f32.gmra.mxu3 %vm4261_vm4, %v1789_v57 }
 0x4c6   : > { %v1743_v62 = vpop.f32.mrf.mxu1 }
 0x4c7   : > { %v1744_v3 = vadd.f32 %v1743_v62, %v1669_v10  ;;  %v3894_v10 = vld [vmem:[%s4064_s6] ss:$0 sm:$0xff] }
 0x4c9   : > { %v1774_v49 = vadd.f32 %v3783_v36, %v1744_v3 }
 0x4cb   : > { %v1790_v8 = vmax.f32 %v1774_v49, 0.0 }
 0x4cd   : > { %2458 = vmatmul.msk.f32.gmra.mxu3 %vm4268_vm12, %v1790_v8  ;;  %vm4270_vm12 = vmmov %vm4261_vm4 }
 0x4ce   : > { %v1746_v26 = vpop.f32.mrf.mxu1 }
 0x4cf   : > { %v1747_v34 = vadd.f32 %v1746_v26, %v1671_v13 }
 0x4d1   : > { %v1775_v21 = vadd.f32 %v3783_v36, %v1747_v34 }
 0x4d3   : > { %v1791_v32 = vmax.f32 %v1775_v21, 0.0 }
 0x4d5   : > { %2459 = vmatmul.msk.f32.gmra.mxu3 %vm4269_vm8, %v1791_v32  ;;  %vm4271_vm8 = vmmov %vm4261_vm4 }
 0x4d6   : > { %v1749_v31 = vpop.f32.mrf.mxu1 }
 0x4d7   : > { %v1750_v42 = vadd.f32 %v1749_v31, %v1673_v53 }
 0x4d9   : > { %v1776_v55 = vadd.f32 %v3783_v36, %v1750_v42 }
 0x4db   : > { %v1792_v24 = vmax.f32 %v1776_v55, 0.0 }
 0x4dd   : > { %2460 = vmatmul.msk.f32.gmra.mxu3 %vm4261_vm4, %v1792_v24 }
 0x4de   : > { %v1752_v61 = vpop.f32.mrf.mxu1 }
 0x4df   : > { %v1753_v54 = vadd.f32 %v1752_v61, %v1675_v33 }
 0x4e1   : > { %v1777_v9 = vadd.f32 %v3783_v36, %v1753_v54 }
 0x4e3   : > { %v1793_v30 = vmax.f32 %v1777_v9, 0.0 }
 0x4e5   : > { %2461 = vmatmul.msk.f32.gmra.mxu3 %vm4270_vm12, %v1793_v30  ;;  %vm4284_vm12 = vcmp.eq.s32.totalorder %v3163_v28, 6 }
 0x4e6   : > { %v1755_v37 = vpop.f32.mrf.mxu1 }
 0x4e7   : > { %v1756_v41 = vadd.f32 %v1755_v37, %v1677_v0 }
 0x4e9   : > { %v1778_v14 = vadd.f32 %v3783_v36, %v1756_v41 }
 0x4eb   : > { %v1794_v39 = vmax.f32 %v1778_v14, 0.0 }
 0x4ed   : > { %2462 = vmatmul.msk.f32.gmra.mxu3 %vm4271_vm8, %v1794_v39 }
 0x4ee   : > { %v1758_v48 = vpop.f32.mrf.mxu1 }
 0x4ef   : > { %v1759_v19 = vadd.f32 %v1758_v48, %v1679_v50 }
 0x4f1   : > { %v1779_v5 = vadd.f32 %v3783_v36, %v1759_v19 }
 0x4f3   : > { %v1795_v16 = vmax.f32 %v1779_v5, 0.0 }
 0x4f5   : > { %2463 = vmatmul.msk.f32.gmra.mxu3 %vm4261_vm4, %v1795_v16  ;;  %vm4286_vm4 = vcmp.eq.s32.totalorder %v3163_v28, 7 }
 0x500   : > { %v1866_v59 = vpop.f32.mrf.mxu3 }
 0x508   : > { %v1869_v58 = vpop.f32.mrf.mxu3 }
 0x510   : > { %v1872_v47 = vpop.f32.mrf.mxu3 }
 0x518   : > { %v1875_v25 = vpop.f32.mrf.mxu3 }
 0x520   : > { %v1878_v1 = vpop.f32.mrf.mxu3 }
 0x528   : > { %v1881_v46 = vpop.f32.mrf.mxu3 }
 0x530   : > { %v1884_v6 = vpop.f32.mrf.mxu3 }
 0x538   : > { %v1887_v35 = vpop.f32.mrf.mxu3 }
 0x540   : > { %v1890_v56 = vpop.f32.mrf.mxu3 }
 0x548   : > { %v1893_v29 = vpop.f32.mrf.mxu3 }
 0x550   : > { %v1896_v18 = vpop.f32.mrf.mxu3 }
 0x558   : > { %v1899_v22 = vpop.f32.mrf.mxu3 }
 0x560   : > { %v1902_v12 = vpop.f32.mrf.mxu3 }
 0x568   : > { %v1905_v52 = vpop.f32.mrf.mxu3 }
 0x569   : > { %1956 = vrot.lane.b32.xlu1 %v1905_v52, %s2652_s14 }
 0x570   : > { %v1908_v36 = vpop.f32.mrf.mxu3 }
 0x571   : > { %1950 = vrot.lane.b32.xlu1 %v1896_v18, %s2652_s14  ;;  %1958 = vrot.lane.b32.xlu2 %v1908_v36, %s2652_s14 }
 0x578   : > { %v1911_v57 = vpop.f32.mrf.mxu3 }
 0x579   : > { %1944 = vrot.lane.b32.xlu1 %v1887_v35, %s2652_s14  ;;  %1952 = vrot.lane.b32.xlu2 %v1899_v22, %s2652_s14 }
 0x57a   : > { %1960 = vrot.lane.b32.xlu0 %v1911_v57, %s2652_s14  ;;  %1978 = vmatpush.msrb.mxu2 %v1911_v57 }
 0x57c   : > { %1979 = vmatpush.msrb.mxu2 %v1908_v36 }
 0x57e   : > { %1980 = vmatpush.msrb.mxu2 %v1905_v52 }
 0x580   : > { %1981 = vmatpush.msrb.mxu2 %v1902_v12 }
 0x581   : > { %1938 = vrot.lane.b32.xlu1 %v1878_v1, %s2652_s14  ;;  %1946 = vrot.lane.b32.xlu2 %v1890_v56, %s2652_s14 }
 0x582   : > { %1954 = vrot.lane.b32.xlu0 %v1902_v12, %s2652_s14  ;;  %1982 = vmatpush.msrb.mxu2 %v1899_v22 }
 0x584   : > { %1983 = vmatpush.msrb.mxu2 %v1896_v18 }
 0x586   : > { %1984 = vmatpush.msrb.mxu2 %v1893_v29 }
 0x588   : > { %1985 = vmatpush.msrb.mxu2 %v1890_v56 }
 0x589   : > { %1932 = vrot.lane.b32.xlu1 %v1869_v58, %s2652_s14  ;;  %1940 = vrot.lane.b32.xlu2 %v1881_v46, %s2652_s14 }
 0x58a   : > { %1948 = vrot.lane.b32.xlu0 %v1893_v29, %s2652_s14  ;;  %1986 = vmatpush.msrb.mxu2 %v1887_v35 }
 0x58c   : > { %1987 = vmatpush.msrb.mxu2 %v1884_v6 }
 0x58e   : > { %1988 = vmatpush.msrb.mxu2 %v1881_v46 }
 0x590   : > { %1989 = vmatpush.msrb.mxu2 %v1878_v1 }
 0x591   : > { %1934 = vrot.lane.b32.xlu2 %v1872_v47, %s2652_s14 }
 0x592   : > { %1942 = vrot.lane.b32.xlu0 %v1884_v6, %s2652_s14  ;;  %1990 = vmatpush.msrb.mxu2 %v1875_v25 }
 0x594   : > { %1991 = vmatpush.msrb.mxu2 %v1872_v47 }
 0x596   : > { %1992 = vmatpush.msrb.mxu2 %v1869_v58 }
 0x598   : > { %1993 = vmatpush.msrb.mxu2 %v1866_v59 }
 0x599   : > { %2464 = vmatmul.msk.f32.vlgmr.msrb.gmra.mxu2 %vm4255_vm13, %v2651_v17  ;;  %vm4279_vm13 = vcmp.eq.s32.totalorder %v3163_v28, 4 }
 0x59a   : > { %1936 = vrot.lane.b32.xlu0 %v1875_v25, %s2652_s14 }
 0x5a1   : > { %2465 = vmatmul.msk.f32.gmra.mxu2 %vm4256_vm14, %v2651_v17 }
 0x5a2   : > { %1930 = vrot.lane.b32.xlu0 %v1866_v59, %s2652_s14 }
 0x5a9   : > { %2466 = vmatmul.msk.f32.gmra.mxu2 %vm4257_vm0, %v2651_v17 }
 0x5b1   : > { %2467 = vmatmul.msk.f32.gmra.mxu2 %vm4258_vm5, %v2651_v17 }
 0x5b9   : > { %2468 = vmatmul.msk.f32.gmra.mxu2 %vm4259_vm2, %v2651_v17  ;;  %vm4283_vm2 = vcmp.eq.s32.totalorder %v3163_v28, 5 }
 0x5c1   : > { %2469 = vmatmul.msk.f32.gmra.mxu2 %vm4260_vm6, %v2651_v17  ;;  %vm4278_vm6 = vcmp.eq.s32.totalorder %v3163_v28, 3 }
 0x5c2   : > { %vm4285_vm8 = vmmov %vm4278_vm6 }
 0x5c9   : > { %2470 = vmatmul.msk.f32.gmra.mxu2 %vm3610_vm3, %v2651_v17  ;;  %vm4272_vm3 = vnez %v4216_v63 }
 0x5cb   : > { %v1959_v3 = vpop.permute.xlu2 %1958 }
 0x5d1   : > { %2471 = vmatmul.msk.f32.gmra.mxu2 %vm3624_vm7, %v2651_v17  ;;  %vm4276_vm7 = vcmp.eq.s32.totalorder %v3163_v28, 0 }
 0x5d2   : > { %vm4281_vm0 = vmmov %vm4276_vm7 }
 0x5d3   : > { %v1953_v31 = vpop.permute.xlu2 %1952 }
 0x5d9   : > { %2472 = vmatmul.msk.f32.gmra.mxu2 %vm3497_vm11, %v2651_v17  ;;  %vm4273_vm11 = vnez %v4218_v43 }
 0x5db   : > { %v1957_v13 = vpop.permute.xlu1 %1956  ;;  %v1947_v0 = vpop.permute.xlu2 %1946 }
 0x5e1   : > { %2473 = vmatmul.msk.f32.gmra.mxu2 %vm3507_vm15, %v2651_v17  ;;  %vm4274_vm15 = vnez %v4220_v38 }
 0x5e3   : > { %v1951_v24 = vpop.permute.xlu1 %1950  ;;  %v1941_v16 = vpop.permute.xlu2 %1940 }
 0x5e9   : > { %2474 = vmatmul.msk.f32.gmra.mxu2 %vm4253_vm1, %v2651_v17  ;;  %vm4277_vm1 = vcmp.eq.s32.totalorder %v3163_v28, 2 }
 0x5ea   : > { %vm4282_vm5 = vmmov %vm4277_vm1 }
 0x5eb   : > { %v1945_v14 = vpop.permute.xlu1 %1944  ;;  %v1935_v56 = vpop.permute.xlu2 %1934 }
 0x5ec   : > { %v1961_v40 = vpop.permute.xlu0 %1960 }
 0x5f1   : > { %2475 = vmatmul.msk.f32.gmra.mxu2 %vm3521_vm9, %v2651_v17  ;;  %vm2062_vm9 = vcmask 64512  }
 0x5f3   : > { %v1939_v47 = vpop.permute.xlu1 %1938 }
 0x5f4   : > { %v1955_v21 = vpop.permute.xlu0 %1954 }
 0x5f9   : > { %2476 = vmatmul.msk.f32.gmra.mxu2 %vm3528_vm10, %v2651_v17  ;;  %vm4275_vm10 = vcmp.eq.s32.totalorder %v3163_v28, 1 }
 0x5fa   : > { %vm4280_vm14 = vmmov %vm4275_vm10 }
 0x5fb   : > { %v1933_v22 = vpop.permute.xlu1 %1932 }
 0x5fc   : > { %v1949_v54 = vpop.permute.xlu0 %1948 }
 0x601   : > { %2477 = vmatmul.msk.f32.gmra.mxu2 %vm4272_vm3, %v2651_v17  ;;  %vm4287_vm3 = vmmov %vm4279_vm13 }
 0x604   : > { %v1943_v48 = vpop.permute.xlu0 %1942 }
 0x609   : > { %2478 = vmatmul.msk.f32.gmra.mxu2 %vm4273_vm11, %v2651_v17  ;;  %vm4288_vm11 = vmmov %vm4283_vm2 }
 0x60c   : > { %v1937_v46 = vpop.permute.xlu0 %1936 }
 0x611   : > { %2479 = vmatmul.msk.f32.gmra.mxu2 %vm4274_vm15, %v2651_v17  ;;  %vm4289_vm15 = vmmov %vm4284_vm12 }
 0x614   : > { %v1931_v36 = vpop.permute.xlu0 %1930 }
 0x61c   : > { %v3881_v15 = vpop.f32.mrf.mxu2 }
 0x61d   : > { %v1996_v57 = vadd.f32 %v3881_v15, %v1931_v36 }
 0x624   : > { %v3883_v45 = vpop.f32.mrf.mxu2 }
 0x625   : > { %v1999_v12 = vadd.f32 %v3883_v45, %v1933_v22 }
 0x62c   : > { %v3885_v7 = vpop.f32.mrf.mxu2 }
 0x62d   : > { %v2002_v29 = vadd.f32 %v3885_v7, %v1935_v56  ;;  %v2047_v7 = vadd.f32 %v3894_v10, %v1999_v12 }
 0x62f   : > { %v2048_v52 = vadd.f32 %v3894_v10, %v2002_v29 }
 0x634   : > { %v3887_v51 = vpop.f32.mrf.mxu2 }
 0x635   : > { %v2005_v6 = vadd.f32 %v3887_v51, %v1937_v46  ;;  %v2046_v51 = vadd.f32 %v3894_v10, %v1996_v57 }
 0x637   : > { %v2049_v18 = vadd.f32 %v3894_v10, %v2005_v6 }
 0x63c   : > { %v3889_v11 = vpop.f32.mrf.mxu2 }
 0x63d   : > { %v2008_v25 = vadd.f32 %v3889_v11, %v1939_v47 }
 0x63f   : > { %v2050_v35 = vadd.f32 %v3894_v10, %v2008_v25 }
 0x644   : > { %v2010_v44 = vpop.f32.mrf.mxu2 }
 0x645   : > { %v2011_v59 = vadd.f32 %v2010_v44, %v1941_v16 }
 0x647   : > { %v2051_v1 = vadd.f32 %v3894_v10, %v2011_v59 }
 0x64c   : > { %v2013_v2 = vpop.f32.mrf.mxu2 }
 0x64d   : > { %v2014_v19 = vadd.f32 %v2013_v2, %v1943_v48 }
 0x64f   : > { %v2052_v58 = vadd.f32 %v3894_v10, %v2014_v19 }
 0x654   : > { %v2016_v63 = vpop.f32.mrf.mxu2 }
 0x655   : > { %v2017_v39 = vadd.f32 %v2016_v63, %v1945_v14 }
 0x657   : > { %v2053_v5 = vadd.f32 %v3894_v10, %v2017_v39 }
 0x65c   : > { %v2019_v23 = vpop.f32.mrf.mxu2 }
 0x65d   : > { %v2020_v37 = vadd.f32 %v2019_v23, %v1947_v0 }
 0x65f   : > { %v2054_v50 = vadd.f32 %v3894_v10, %v2020_v37 }
 0x664   : > { %v2022_v43 = vpop.f32.mrf.mxu2 }
 0x665   : > { %v2023_v9 = vadd.f32 %v2022_v43, %v1949_v54 }
 0x667   : > { %v2055_v41 = vadd.f32 %v3894_v10, %v2023_v9 }
 0x66c   : > { %v2025_v27 = vpop.f32.mrf.mxu2 }
 0x66d   : > { %v2026_v33 = vadd.f32 %v2025_v27, %v1951_v24 }
 0x66f   : > { %v3928_v30 = vadd.f32 %v3894_v10, %v2026_v33 }
 0x674   : > { %v2028_v20 = vpop.f32.mrf.mxu2 }
 0x675   : > { %v2029_v42 = vadd.f32 %v2028_v20, %v1953_v31 }
 0x677   : > { %v3921_v61 = vadd.f32 %v3894_v10, %v2029_v42 }
 0x67c   : > { %v2031_v60 = vpop.f32.mrf.mxu2 }
 0x67d   : > { %v2032_v32 = vadd.f32 %v2031_v60, %v1955_v21 }
 0x67f   : > { %v2058_v55 = vadd.f32 %v3894_v10, %v2032_v32 }
 0x684   : > { %v2034_v38 = vpop.f32.mrf.mxu2 }
 0x685   : > { %v2035_v26 = vadd.f32 %v2034_v38, %v1957_v13 }
 0x687   : > { %v3911_v53 = vadd.f32 %v3894_v10, %v2035_v26 }
 0x68c   : > { %v2037_v17 = vpop.f32.mrf.mxu2 }
 0x68d   : > { %v2038_v49 = vadd.f32 %v2037_v17, %v1959_v3 }
 0x68f   : > { %v3904_v34 = vadd.f32 %v3894_v10, %v2038_v49 }
 0x694   : > { %v2040_v4 = vpop.f32.mrf.mxu2 }
 0x695   : > { %v2041_v62 = vadd.f32 %v2040_v4, %v1961_v40 }
 0x697   : > { %v3897_v8 = vadd.f32 %v3894_v10, %v2041_v62 }
 0x699   : > { %2480 = vmatpush.xpose.msk.msrb.mxu0 %vm2062_vm9, %v3897_v8  ;;  %2519 = vmatpush.xpose.msk.msra.mxu1 %vm2062_vm9, %v3897_v8 }
 0x69d   : > { %2481 = vmatpush.xpose.msk.msrb.mxu0 %vm2062_vm9, %v3904_v34  ;;  %2520 = vmatpush.xpose.msk.msra.mxu1 %vm2062_vm9, %v3904_v34 }
 0x6a1   : > { %2482 = vmatpush.xpose.msk.msrb.mxu0 %vm2062_vm9, %v3911_v53  ;;  %2521 = vmatpush.xpose.msk.msra.mxu1 %vm2062_vm9, %v3911_v53 }
 0x6a5   : > { %2483 = vmatpush.xpose.msk.msrb.mxu0 %vm2062_vm9, %v2058_v55  ;;  %2522 = vmatpush.xpose.msk.msra.mxu1 %vm2062_vm9, %v2058_v55 }
 0x6a9   : > { %2484 = vmatpush.xpose.msk.msrb.mxu0 %vm2062_vm9, %v3921_v61  ;;  %2523 = vmatpush.xpose.msk.msra.mxu1 %vm2062_vm9, %v3921_v61 }
 0x6ad   : > { %2485 = vmatpush.xpose.msk.msrb.mxu0 %vm2062_vm9, %v3928_v30  ;;  %2524 = vmatpush.xpose.msk.msra.mxu1 %vm2062_vm9, %v3928_v30 }
 0x6b1   : > { %2486 = vmatpush.xpose.msk.msrb.mxu0 %vm2062_vm9, %v2055_v41  ;;  %2525 = vmatpush.xpose.msk.msra.mxu1 %vm2062_vm9, %v2055_v41 }
 0x6b5   : > { %2487 = vmatpush.xpose.msk.msrb.mxu0 %vm2062_vm9, %v2054_v50  ;;  %2526 = vmatpush.xpose.msk.msra.mxu1 %vm2062_vm9, %v2054_v50 }
 0x6b9   : > { %2488 = vmatpush.xpose.msk.msrb.mxu0 %vm2062_vm9, %v2053_v5  ;;  %2527 = vmatpush.xpose.msk.msra.mxu1 %vm2062_vm9, %v2053_v5 }
 0x6bd   : > { %2489 = vmatpush.xpose.msk.msrb.mxu0 %vm2062_vm9, %v2052_v58  ;;  %2528 = vmatpush.xpose.msk.msra.mxu1 %vm2062_vm9, %v2052_v58 }
 0x6c1   : > { %2490 = vmatpush.xpose.msk.msrb.mxu0 %vm2062_vm9, %v2051_v1  ;;  %2529 = vmatpush.xpose.msk.msra.mxu1 %vm2062_vm9, %v2051_v1 }
 0x6c5   : > { %2491 = vmatpush.xpose.msk.msrb.mxu0 %vm2062_vm9, %v2050_v35  ;;  %2530 = vmatpush.xpose.msk.msra.mxu1 %vm2062_vm9, %v2050_v35 }
 0x6c9   : > { %2492 = vmatpush.xpose.msk.msrb.mxu0 %vm2062_vm9, %v2049_v18  ;;  %2531 = vmatpush.xpose.msk.msra.mxu1 %vm2062_vm9, %v2049_v18 }
 0x6cd   : > { %2493 = vmatpush.xpose.msk.msrb.mxu0 %vm2062_vm9, %v2048_v52  ;;  %2532 = vmatpush.xpose.msk.msra.mxu1 %vm2062_vm9, %v2048_v52 }
 0x6d1   : > { %2494 = vmatpush.xpose.msk.msrb.mxu0 %vm2062_vm9, %v2047_v7  ;;  %2533 = vmatpush.xpose.msk.msra.mxu1 %vm2062_vm9, %v2047_v7 }
 0x6d5   : > { %2495 = vmatpush.xpose.msk.msrb.mxu0 %vm2062_vm9, %v2046_v51  ;;  %2534 = vmatpush.xpose.msk.msra.mxu1 %vm2062_vm9, %v2046_v51 }
 0x6d8   : > { %2496 = vmatmul.msk.f32.vlgmr.msrb.gmra.mxu0 %vm2062_vm9, %v2046_v51  ;;  %2508 = vmatmul.msk.f32.vlgmr.msra.gmra.mxu1 %vm2062_vm9, %v2058_v55 }
 0x6e0   : > { %2497 = vmatmul.msk.f32.gmra.mxu0 %vm2062_vm9, %v2047_v7  ;;  %2509 = vmatmul.msk.f32.gmra.mxu1 %vm2062_vm9, %v3911_v53 }
 0x6e8   : > { %2498 = vmatmul.msk.f32.gmra.mxu0 %vm2062_vm9, %v2048_v52  ;;  %2510 = vmatmul.msk.f32.gmra.mxu1 %vm2062_vm9, %v3904_v34 }
 0x6f0   : > { %2499 = vmatmul.msk.f32.gmra.mxu0 %vm2062_vm9, %v2049_v18  ;;  %2511 = vmatmul.msk.f32.gmra.mxu1 %vm2062_vm9, %v3897_v8 }
 0x6f8   : > { %2500 = vmatmul.msk.f32.gmra.mxu0 %vm2062_vm9, %v2050_v35 }
 0x700   : > { %2501 = vmatmul.msk.f32.gmra.mxu0 %vm2062_vm9, %v2051_v1 }
 0x708   : > { %2502 = vmatmul.msk.f32.gmra.mxu0 %vm2062_vm9, %v2052_v58 }
 0x710   : > { %2503 = vmatmul.msk.f32.gmra.mxu0 %vm2062_vm9, %v2053_v5 }
 0x718   : > { %2504 = vmatmul.msk.f32.gmra.mxu0 %vm2062_vm9, %v2054_v50 }
 0x720   : > { %2505 = vmatmul.msk.f32.gmra.mxu0 %vm2062_vm9, %v2055_v41 }
 0x728   : > { %2506 = vmatmul.msk.f32.gmra.mxu0 %vm2062_vm9, %v3928_v30 }
 0x730   : > { %2507 = vmatmul.msk.f32.gmra.mxu0 %vm2062_vm9, %v3921_v61  ;;  %vm4290_vm9 = vmmov %vm4286_vm4 }
 0x755   : > { %v2128_v15 = vpop.f32.mrf.mxu0  ;;  %v2164_v27 = vpop.f32.mrf.mxu1 }
 0x756   : > { %v2179_v40 = vsel %vm4276_vm7, %v2128_v15, 0.0  ;;  %v2221_v24 = vsel %vm4284_vm12, %v2164_v27, 0.0 }
 0x75d   : > { %v2131_v45 = vpop.f32.mrf.mxu0  ;;  %v2167_v60 = vpop.f32.mrf.mxu1 }
 0x75e   : > { %v2180_v32 = vsel %vm4281_vm0, %v2131_v45, 0.0  ;;  %v2222_v19 = vsel %vm4289_vm15, %v2167_v60, 0.0 }
 0x765   : > { %v2134_v11 = vpop.f32.mrf.mxu0  ;;  %v2170_v26 = vpop.f32.mrf.mxu1 }
 0x766   : > { %v2186_v38 = vsel %vm4275_vm10, %v2134_v11, 0.0  ;;  %v2228_v9 = vsel %vm4286_vm4, %v2170_v26, 0.0 }
 0x767   : > { %v2188_v10 = vadd.f32 %v2186_v38, %v2179_v40 }
 0x76d   : > { %v2137_v44 = vpop.f32.mrf.mxu0  ;;  %v2173_v50 = vpop.f32.mrf.mxu1 }
 0x76e   : > { %v2187_v13 = vsel %vm4280_vm14, %v2137_v44, 0.0  ;;  %v2229_v16 = vsel %vm4290_vm9, %v2173_v50, 0.0 }
 0x76f   : > { %v2189_v42 = vadd.f32 %v2187_v13, %v2180_v32 }
 0x775   : > { %v2140_v2 = vpop.f32.mrf.mxu0 }
 0x776   : > { %v2193_v4 = vsel %vm4277_vm1, %v2140_v2, 0.0 }
 0x777   : > { %v2195_v3 = vadd.f32 %v2193_v4, %v2188_v10 }
 0x77d   : > { %v2143_v63 = vpop.f32.mrf.mxu0 }
 0x77e   : > { %v2194_v53 = vsel %vm4282_vm5, %v2143_v63, 0.0 }
 0x77f   : > { %v2196_v61 = vadd.f32 %v2194_v53, %v2189_v42 }
 0x785   : > { %v2146_v23 = vpop.f32.mrf.mxu0 }
 0x786   : > { %v2200_v62 = vsel %vm4278_vm6, %v2146_v23, 0.0 }
 0x787   : > { %v2202_v8 = vadd.f32 %v2200_v62, %v2195_v3 }
 0x78d   : > { %v2149_v43 = vpop.f32.mrf.mxu0 }
 0x78e   : > { %v2201_v33 = vsel %vm4285_vm8, %v2149_v43, 0.0 }
 0x78f   : > { %v2203_v0 = vadd.f32 %v2201_v33, %v2196_v61 }
 0x795   : > { %v2152_v20 = vpop.f32.mrf.mxu0 }
 0x796   : > { %v2207_v49 = vsel %vm4279_vm13, %v2152_v20, 0.0 }
 0x797   : > { %v2209_v34 = vadd.f32 %v2207_v49, %v2202_v8 }
 0x79d   : > { %v2155_v17 = vpop.f32.mrf.mxu0 }
 0x79e   : > { %v2208_v30 = vsel %vm4287_vm3, %v2155_v17, 0.0 }
 0x79f   : > { %v2210_v41 = vadd.f32 %v2208_v30, %v2203_v0 }
 0x7a5   : > { %v2158_v21 = vpop.f32.mrf.mxu0 }
 0x7a6   : > { %v2214_v31 = vsel %vm4283_vm2, %v2158_v21, 0.0 }
 0x7a7   : > { %v2216_v55 = vadd.f32 %v2214_v31, %v2209_v34 }
 0x7a9   : > { %v2223_v54 = vadd.f32 %v2221_v24, %v2216_v55 }
 0x7ab   : > { %v2230_v37 = vadd.f32 %v2228_v9, %v2223_v54 }
 0x7ad   : > { %2232 = vst [vmem:[%s272_s22] sm:$0xff] %v2230_v37  ;;  %v2161_v14 = vpop.f32.mrf.mxu0 }
 0x7ae   : > { %v2215_v39 = vsel %vm4288_vm11, %v2161_v14, 0.0 }
 0x7af   : > { %v2217_v48 = vadd.f32 %v2215_v39, %v2210_v41 }
 0x7b1   : > { %v2224_v5 = vadd.f32 %v2222_v19, %v2217_v48 }
 0x7b3   : > { %v2231_v59 = vadd.f32 %v2229_v16, %v2224_v5 }
 0x7b5   : > { %2233 = vst [vmem:[%s272_s22 + $0x8] sm:$0xff] %v2231_v59 }
 0x7b6   : > { %2611 = shalt.err (!%p2608_p3)
}
 0x7b7   : > { %s2653_s17 = smov 128   ;;  %s2654_s19 = smov 8  }
 0x7b8   : > { %2535 = dma.vmem_to_hbm [thread:$0]  (%p2730_p5), %s2248_s23, 256, %s2250_s28, %s2235_s13, %s2653_s17, %s2653_s17, %s2654_s19  }
 0x7b9 PF: > { %p2541_p4 = scmp.ge.s32.totalorder %s2646_s27, 2  ;;  %s2264_s20 = sand.u32 1, %s2634_s24  }
 0x7ba   : > { %s2265_s21 = scalar_lea.sflag [#allocation3], %s2264_s20 }
 0x7bb   : > { %p2538_p7 = pnand %p2541_p4, %p2734_p6 }
 0x7bd   : > { %p2539_p8 = pneg %p2538_p7 }
 0x7bf   : > { %2629 = dma.done.wait (%p2539_p8), %s2265_s21, 256  }
 0x7c0   : > { %2631 = vsyncadd (%p2539_p8), %s2265_s21, 4294967040  ;;  %p17_p9 = scmp.ge.s32.totalorder %s2718_s30, 4   ;;  %s4291_s24 = smov %s2638_s25 }
 0x7c1   : > { %s4292_s25 = smov %s2642_s26  ;;  %s4293_s26 = smov %s2728_s10 }
 0x7c2   : > { %s4294_s27 = smov %s2718_s30  ;;  %19 = sbr.rel (!%p17_p9) target bundleno = 3 (0x3), region = 83 }
 0x7c7   :  { %2271 = vsyncpa [#allocation3], 1 }
 0x7c8   :  { %2273 = vsyncpa [#allocation3 + $0x1], 1 }

</bundles_post_ra>
